<compile_context>
chip_gen: v7x
topology: tpu7x:2x2x1
jax: 0.10.0
libtpu: 0.0.40
codegen_flags: <defaults>
</compile_context>

<pallas_src>
import functools
import numpy as np
import jax
import jax.numpy as jnp
from jax import lax
from jax.experimental import pallas as pl
from jax.experimental.pallas import tpu as pltpu

DIM = 128                # module `dim` (forced to 128 by the hardcoded .view)
HIDDEN = 32              # module `hidden_dim`
HIDDEN2 = 2 * HIDDEN     # channels after linear1 / dwconv2 (= 64)
DIM_CONV = DIM // 4      # partial-conv channels (= 32)


# ----------------------------------------------------------------- GELU (tanh)
def _gelu(u):
    # tanh approximation: runs on the EUP slot; |err| vs exact GELU < 1e-3.
    return 0.5 * u * (1.0 + jnp.tanh(0.7978845608028654 * (u + 0.044715 * u * u * u)))


# ------------------------------------------------------------------ the kernel
def hfe_kernel(x_ref, w1z_ref, wtap_ref, wdw9_ref, wpw_ref, w3t_ref, w3b_ref,
               bias_ref, out_ref, *, B, H, W):
    HW = H * W
    N = B * HW

    # ---- boundary masks: built ONCE, shared by both 3x3 convs ----------------
    # (N, 1) int32 row / col index within each image (4-D iota, no div/mod).
    row = lax.broadcasted_iota(jnp.int32, (B, H, W, 1), 1).reshape(N, 1)
    col = lax.broadcasted_iota(jnp.int32, (B, H, W, 1), 2).reshape(N, 1)
    up_ok, down_ok = row >= 1, row <= H - 2        # tap needs row-1 / row+1
    left_ok, right_ok = col >= 1, col <= W - 2     # tap needs col-1 / col+1

    tap_masks = []
    for tap in range(9):
        dy, dx = tap // 3 - 1, tap % 3 - 1
        m = None
        for ok, need in ((up_ok, dy == -1), (down_ok, dy == 1),
                         (left_ok, dx == -1), (right_ok, dx == 1)):
            if need:
                m = ok if m is None else jnp.logical_and(m, ok)
        tap_masks.append(m)                        # None for the center tap

    def roll_rows(arr, d):
        s = (-d) % N
        return arr if s == 0 else pltpu.roll(arr, shift=s, axis=0)
    # pltpu.roll wraps across image / batch boundaries, but every wrapped row is
    # zeroed by its tap mask before use, so the flattened-roll trick stays exact.

    # ---- fused partial_conv3 + linear1 ----------------------------------------
    # One K=128 base matmul (untouched channels; conv rows of w1 zeroed) plus nine
    # K=32 tap matmuls (wpc9[tap] @ w1_top), all accumulated in f32.
    x = x_ref[...]                                              # (N, DIM) f32
    t_acc = jnp.dot(x.astype(jnp.bfloat16), w1z_ref[...],
                    preferred_element_type=jnp.float32)         # (N, H2)
    xc = x[:, :DIM_CONV]                                        # (N, 32) conv channels
    for tap in range(9):
        dy, dx = tap // 3 - 1, tap % 3 - 1
        r = roll_rows(xc, dy * W + dx)
        m = tap_masks[tap]
        if m is not None:
            r = jnp.where(m, r, 0.0)
        t_acc = t_acc + jnp.dot(r.astype(jnp.bfloat16), wtap_ref[tap],
                                preferred_element_type=jnp.float32)
    t = _gelu(t_acc + bias_ref[0:1, :HIDDEN2])                  # (N, H2) f32

    # ---- dwconv2: depthwise 3x3 (in-kernel masks) + bias, 1x1 conv, GELU ------
    wdw = wdw9_ref[...]                                         # (9, H2) f32
    acc = t * wdw[4]                                            # center tap, no mask
    for tap in range(9):
        if tap == 4:
            continue
        dy, dx = tap // 3 - 1, tap % 3 - 1
        r = jnp.where(tap_masks[tap], roll_rows(t, dy * W + dx), 0.0)
        acc = acc + r * wdw[tap]                                # one select + FMA / tap
    dwc = acc + bias_ref[1:2, :HIDDEN2]
    local = _gelu(jnp.dot(dwc.astype(jnp.bfloat16), wpw_ref[...],
                          preferred_element_type=jnp.float32)
                  + bias_ref[2:3, :HIDDEN2])                    # (N, H2) f32

    # ---- global path: per-image GAP of t, projected through w3's bottom half --
    # linear3 on cat([local, global]) is split into two matmuls so no lane-offset
    # concat and no (N, H2) global broadcast are needed.  B is tiny here; for
    # large B switch to reshape(B, HW, H2) + mean(axis=1) instead of the slices.
    g = jnp.concatenate(
        [jnp.mean(t[b * HW:(b + 1) * HW, :], axis=0, keepdims=True)
         for b in range(B)], axis=0)                            # (B, H2)
    g_proj = jnp.dot(g.astype(jnp.bfloat16), w3b_ref[...],
                     preferred_element_type=jnp.float32)        # (B, DIM)
    g_bc = jnp.concatenate(
        [jnp.broadcast_to(g_proj[b:b + 1, :], (HW, DIM)) for b in range(B)],
        axis=0)                                                 # (N, DIM)

    # ---- local projection + residual (x_ref re-read: one cheap vld) -----------
    out_ref[...] = (jnp.dot(local.astype(jnp.bfloat16), w3t_ref[...],
                            preferred_element_type=jnp.float32)
                    + g_bc + bias_ref[3:4, :] + x_ref[...])


# --------------------------------------------------------------------- wrappers
def hfe_channels_last(x_cl, params, *, B, H, W):
    """Core entry point: x_cl is (B*H*W, DIM) channels-last; returns same layout.

    grid=(1,) with batch folded into the matmul M dim suits v5e/v6e (1 TC) at this
    size.  On v7x (2 TCs) or for larger H, W / B, tile the row axis with a BlockSpec
    grid (row blocks a multiple of 8, M >= 256) and dimension_semantics=("parallel",)
    so both cores are used and VMEM (64 MiB on v7x) stays bounded."""
    N = B * H * W
    args = (x_cl, params["w1z_bf"], params["wtap_bf"], params["wdw9"],
            params["wpw_bf"], params["w3t_bf"], params["w3b_bf"], params["bias"])

    def full_spec(a):
        nd = a.ndim
        return pl.BlockSpec(a.shape, lambda i, _nd=nd: (0,) * _nd)

    return pl.pallas_call(
        functools.partial(hfe_kernel, B=B, H=H, W=W),
        out_shape=jax.ShapeDtypeStruct((N, DIM), jnp.float32),
        grid_spec=pltpu.PrefetchScalarGridSpec(
            num_scalar_prefetch=0,
            grid=(1,),
            in_specs=[full_spec(a) for a in args],
            out_specs=pl.BlockSpec((N, DIM), lambda i: (0, 0)),
        ),
        compiler_params=pltpu.CompilerParams(
            dimension_semantics=("arbitrary",)),
    )(*args)


def hfe_forward(x_nchw, params):
    """NCHW module interface. In a surrounding model, keep activations
    channels-last and call hfe_channels_last directly (no transposes)."""
    B, C, H, W = x_nchw.shape
    assert C == DIM
    x_cl = jnp.transpose(x_nchw, (0, 2, 3, 1)).reshape(B * H * W, C)
    out_cl = hfe_channels_last(x_cl, params, B=B, H=H, W=W)
    return out_cl.reshape(B, H, W, C).transpose(0, 3, 1, 2)


# ----------------------------------------------------- deterministic parameters
def init_params(key):
    ks = jax.random.split(key, 9)

    def nrm(k, shape, fan_in):
        return jax.random.normal(k, shape, jnp.float32) / np.float32(np.sqrt(fan_in))

    # partial_conv3 : Conv2d(DIM_CONV, DIM_CONV, 3, 1, 1, bias=False)
    wpc = nrm(ks[0], (3, 3, DIM_CONV, DIM_CONV), 9 * DIM_CONV)   # (ky,kx,ci,co)
    # linear1 : Linear(DIM, HIDDEN2) + GELU
    w1 = nrm(ks[1], (DIM, HIDDEN2), DIM)                         # (in, out)
    b1 = nrm(ks[2], (1, HIDDEN2), DIM)
    # dwconv2 : depthwise Conv2d(HIDDEN2, groups=HIDDEN2), Conv2d 1x1, GELU
    wdw = nrm(ks[3], (3, 3, 1, HIDDEN2), 9)
    bdw = nrm(ks[4], (1, HIDDEN2), 9)
    wpw = nrm(ks[5], (HIDDEN2, HIDDEN2), HIDDEN2)                # (ci, co)
    bpw = nrm(ks[6], (1, HIDDEN2), HIDDEN2)
    # linear3 : Linear(2*HIDDEN2, DIM)
    w3 = nrm(ks[7], (2 * HIDDEN2, DIM), 2 * HIDDEN2)
    b3 = nrm(ks[8], (1, DIM), 2 * HIDDEN2)

    # Fused [partial_conv3 -> linear1]: the conv only feeds the first DIM_CONV rows
    # of w1, so the base matmul uses w1 with those rows zeroed and each 3x3 tap gets
    # a tiny (DIM_CONV, HIDDEN2) weight wpc9[tap] @ w1_top (no structural zeros kept).
    w1t = w1[:DIM_CONV, :]
    w1z = w1.at[:DIM_CONV, :].set(0.0)
    wpc9 = wpc.reshape(9, DIM_CONV, DIM_CONV)
    wtap = jnp.stack([wpc9[t] @ w1t for t in range(9)], axis=0)     # (9, 32, 64)

    # One packed bias array: rows = [b1 | bdw | bpw | b3], zero-padded to DIM lanes.
    bias = jnp.zeros((4, DIM), jnp.float32)
    bias = bias.at[0, :HIDDEN2].set(b1[0])
    bias = bias.at[1, :HIDDEN2].set(bdw[0])
    bias = bias.at[2, :HIDDEN2].set(bpw[0])
    bias = bias.at[3, :].set(b3[0])

    # TODO(synk): self.dwconv, self.linear2, self.spectral_conv, self.linear4 and
    # self.weight are never used in forward() -> not instantiated here.
    return dict(
        # kernel-side parameters (bf16 MXU operands, f32 accumulation)
        w1z_bf=w1z.astype(jnp.bfloat16),
        wtap_bf=wtap.astype(jnp.bfloat16),
        wdw9=wdw.reshape(9, HIDDEN2),
        wpw_bf=wpw.astype(jnp.bfloat16),
        w3t_bf=w3[:HIDDEN2, :].astype(jnp.bfloat16),
        w3b_bf=w3[HIDDEN2:, :].astype(jnp.bfloat16),
        bias=bias,
        # raw float32 copies for the pure-JAX reference
        wpc=wpc, w1=w1, b1=b1, wdw=wdw, bdw=bdw, wpw=wpw, bpw=bpw, w3=w3, b3=b3)


# --------------------------------------------------------- pure-JAX reference
def hfe_reference(x, p):
    B, C, H, W = x.shape
    gelu = lambda v: jax.nn.gelu(v, approximate=False)
    dn = ("NCHW", "OIHW", "NCHW")

    x1, x2 = x[:, :DIM_CONV], x[:, DIM_CONV:]
    y1 = lax.conv_general_dilated(x1, jnp.transpose(p["wpc"], (3, 2, 0, 1)),
                                  (1, 1), "SAME", dimension_numbers=dn)
    xc = jnp.concatenate([y1, x2], axis=1)
    xs = jnp.transpose(xc, (0, 2, 3, 1)).reshape(B, H * W, C)
    t = gelu(xs @ p["w1"] + p["b1"])
    timg = jnp.transpose(t.reshape(B, H, W, HIDDEN2), (0, 3, 1, 2))

    dwc = lax.conv_general_dilated(timg, jnp.transpose(p["wdw"], (3, 2, 0, 1)),
                                   (1, 1), "SAME", feature_group_count=HIDDEN2,
                                   dimension_numbers=dn)
    dwc = dwc + p["bdw"].reshape(1, HIDDEN2, 1, 1)
    local = gelu(lax.conv_general_dilated(
        dwc, jnp.transpose(p["wpw"], (1, 0)).reshape(HIDDEN2, HIDDEN2, 1, 1),
        (1, 1), "SAME", dimension_numbers=dn) + p["bpw"].reshape(1, HIDDEN2, 1, 1))

    gfeat = jnp.broadcast_to(jnp.mean(timg, axis=(2, 3), keepdims=True), local.shape)
    fused = jnp.concatenate([local, gfeat], axis=1)
    fused = jnp.transpose(fused, (0, 2, 3, 1)).reshape(B, H * W, 2 * HIDDEN2)
    out = fused @ p["w3"] + p["b3"]
    out = jnp.transpose(out.reshape(B, H, W, DIM), (0, 3, 1, 2))
    return out + x


# ------------------------------------------------------------------------ main
if __name__ == "__main__":
    key = jax.random.PRNGKey(0)
    kx, kp = jax.random.split(key)
    B, H, W = 2, 8, 8
    x = jax.random.normal(kx, (B, DIM, H, W), jnp.float32)
    params = init_params(kp)

    out = jax.block_until_ready(hfe_forward(x, params))
    ref = jax.block_until_ready(hfe_reference(x, params))

    assert out.shape == x.shape == (B, DIM, H, W)
    err = float(jnp.max(jnp.abs(out - ref)))
    # bf16 MXU operands (f32 accumulate) + tanh-GELU: expected error O(1e-3),
    # so tolerance is relaxed to 2e-2 vs the exact-f32 reference.
    assert err < 2e-2, f"max abs err {err}"
    print("KERNEL_OK")
</pallas_src>

<mosaic_0001>
module attributes {stable_mosaic.version = 11 : i64} {
  func.func @hfe_kernel(%arg0: i32, %arg1: memref<128x128xf32, #tpu.memory_space<vmem>>, %arg2: memref<128x64xbf16, #tpu.memory_space<vmem>>, %arg3: memref<9x32x64xbf16, #tpu.memory_space<vmem>>, %arg4: memref<9x64xf32, #tpu.memory_space<vmem>>, %arg5: memref<64x64xbf16, #tpu.memory_space<vmem>>, %arg6: memref<64x128xbf16, #tpu.memory_space<vmem>>, %arg7: memref<64x128xbf16, #tpu.memory_space<vmem>>, %arg8: memref<4x128xf32, #tpu.memory_space<vmem>>, %arg9: memref<128x128xf32, #tpu.memory_space<vmem>>) attributes {dimension_semantics = [#tpu.dimension_semantics<arbitrary>], iteration_bounds = array<i64: 1>, scalar_prefetch = 0 : i64, scratch_operands = 0 : i64, tpu.core_type = #tpu.core_type<tc>, window_params = [{pipeline_mode = #tpu.pipeline_mode<synchronous>, transform_indices = @transform_0, window_bounds = array<i64: 128, 128>}, {pipeline_mode = #tpu.pipeline_mode<synchronous>, transform_indices = @transform_1, window_bounds = array<i64: 128, 64>}, {pipeline_mode = #tpu.pipeline_mode<synchronous>, transform_indices = @transform_2, window_bounds = array<i64: 9, 32, 64>}, {pipeline_mode = #tpu.pipeline_mode<synchronous>, transform_indices = @transform_3, window_bounds = array<i64: 9, 64>}, {pipeline_mode = #tpu.pipeline_mode<synchronous>, transform_indices = @transform_4, window_bounds = array<i64: 64, 64>}, {pipeline_mode = #tpu.pipeline_mode<synchronous>, transform_indices = @transform_5, window_bounds = array<i64: 64, 128>}, {pipeline_mode = #tpu.pipeline_mode<synchronous>, transform_indices = @transform_6, window_bounds = array<i64: 64, 128>}, {pipeline_mode = #tpu.pipeline_mode<synchronous>, transform_indices = @transform_7, window_bounds = array<i64: 4, 128>}, {pipeline_mode = #tpu.pipeline_mode<synchronous>, transform_indices = @transform_8, window_bounds = array<i64: 128, 128>}]} {
    %0 = tpu.iota {dimensions = array<i32: 1>} : vector<2x8x8x1xi32>
    %1 = vector.shape_cast %0 : vector<2x8x8x1xi32> to vector<128x1xi32>
    %2 = tpu.iota {dimensions = array<i32: 2>} : vector<2x8x8x1xi32>
    %3 = vector.shape_cast %2 : vector<2x8x8x1xi32> to vector<128x1xi32>
    %c1_i32 = arith.constant 1 : i32
    %4 = vector.broadcast %c1_i32 : i32 to vector<128x1xi32>
    %5 = arith.cmpi sge, %1, %4 : vector<128x1xi32>
    %c6_i32 = arith.constant 6 : i32
    %6 = vector.broadcast %c6_i32 : i32 to vector<128x1xi32>
    %7 = arith.cmpi sle, %1, %6 : vector<128x1xi32>
    %c1_i32_0 = arith.constant 1 : i32
    %8 = vector.broadcast %c1_i32_0 : i32 to vector<128x1xi32>
    %9 = arith.cmpi sge, %3, %8 : vector<128x1xi32>
    %c6_i32_1 = arith.constant 6 : i32
    %10 = vector.broadcast %c6_i32_1 : i32 to vector<128x1xi32>
    %11 = arith.cmpi sle, %3, %10 : vector<128x1xi32>
    %12 = arith.andi %5, %9 : vector<128x1xi1>
    %13 = arith.andi %5, %11 : vector<128x1xi1>
    %14 = arith.andi %7, %9 : vector<128x1xi1>
    %15 = arith.andi %7, %11 : vector<128x1xi1>
    %c0 = arith.constant 0 : index
    %c0_2 = arith.constant 0 : index
    %16 = vector.load %arg1[%c0, %c0_2] : memref<128x128xf32, #tpu.memory_space<vmem>>, vector<128x128xf32>
    %17 = arith.truncf %16 : vector<128x128xf32> to vector<128x128xbf16>
    %c0_3 = arith.constant 0 : index
    %c0_4 = arith.constant 0 : index
    %18 = vector.load %arg2[%c0_3, %c0_4] : memref<128x64xbf16, #tpu.memory_space<vmem>>, vector<128x64xbf16>
    %cst = arith.constant dense<0.000000e+00> : vector<128x64xf32>
    %19 = tpu.matmul %17, %18, %cst {dimension_numbers = #tpu.dot_dimension_numbers<[1], [0], [0], [1], [0, 0, 1, 1], [], []>} : vector<128x128xbf16>, vector<128x64xbf16>, vector<128x64xf32> -> vector<128x64xf32>
    %20 = vector.extract_strided_slice %16 {offsets = [0, 0], sizes = [128, 32], strides = [1, 1]} : vector<128x128xf32> to vector<128x32xf32>
    %c9_i32 = arith.constant 9 : i32
    %21 = tpu.dynamic_rotate %20 by %c9_i32 dim 0 : vector<128x32xf32>, i32 -> vector<128x32xf32>
    %cst_5 = arith.constant 0.000000e+00 : f32
    %22 = vector.shape_cast %12 : vector<128x1xi1> to vector<128x1xi1>
    %23 = vector.broadcast %22 : vector<128x1xi1> to vector<128x32xi1>
    %24 = vector.broadcast %cst_5 : f32 to vector<128x32xf32>
    %25 = arith.select %23, %21, %24 : vector<128x32xi1>, vector<128x32xf32>
    %26 = arith.truncf %25 : vector<128x32xf32> to vector<128x32xbf16>
    %c0_6 = arith.constant 0 : index
    %c0_7 = arith.constant 0 : index
    %c0_8 = arith.constant 0 : index
    %27 = vector.load %arg3[%c0_6, %c0_7, %c0_8] : memref<9x32x64xbf16, #tpu.memory_space<vmem>>, vector<1x32x64xbf16>
    %28 = vector.shape_cast %27 : vector<1x32x64xbf16> to vector<32x64xbf16>
    %cst_9 = arith.constant dense<0.000000e+00> : vector<128x64xf32>
    %29 = tpu.matmul %26, %28, %cst_9 {dimension_numbers = #tpu.dot_dimension_numbers<[1], [0], [0], [1], [0, 0, 1, 1], [], []>} : vector<128x32xbf16>, vector<32x64xbf16>, vector<128x64xf32> -> vector<128x64xf32>
    %30 = arith.addf %19, %29 : vector<128x64xf32>
    %c8_i32 = arith.constant 8 : i32
    %31 = tpu.dynamic_rotate %20 by %c8_i32 dim 0 : vector<128x32xf32>, i32 -> vector<128x32xf32>
    %cst_10 = arith.constant 0.000000e+00 : f32
    %32 = vector.shape_cast %5 : vector<128x1xi1> to vector<128x1xi1>
    %33 = vector.broadcast %32 : vector<128x1xi1> to vector<128x32xi1>
    %34 = vector.broadcast %cst_10 : f32 to vector<128x32xf32>
    %35 = arith.select %33, %31, %34 : vector<128x32xi1>, vector<128x32xf32>
    %36 = arith.truncf %35 : vector<128x32xf32> to vector<128x32xbf16>
    %c1 = arith.constant 1 : index
    %c0_11 = arith.constant 0 : index
    %c0_12 = arith.constant 0 : index
    %37 = vector.load %arg3[%c1, %c0_11, %c0_12] : memref<9x32x64xbf16, #tpu.memory_space<vmem>>, vector<1x32x64xbf16>
    %38 = vector.shape_cast %37 : vector<1x32x64xbf16> to vector<32x64xbf16>
    %cst_13 = arith.constant dense<0.000000e+00> : vector<128x64xf32>
    %39 = tpu.matmul %36, %38, %cst_13 {dimension_numbers = #tpu.dot_dimension_numbers<[1], [0], [0], [1], [0, 0, 1, 1], [], []>} : vector<128x32xbf16>, vector<32x64xbf16>, vector<128x64xf32> -> vector<128x64xf32>
    %40 = arith.addf %30, %39 : vector<128x64xf32>
    %c7_i32 = arith.constant 7 : i32
    %41 = tpu.dynamic_rotate %20 by %c7_i32 dim 0 : vector<128x32xf32>, i32 -> vector<128x32xf32>
    %cst_14 = arith.constant 0.000000e+00 : f32
    %42 = vector.shape_cast %13 : vector<128x1xi1> to vector<128x1xi1>
    %43 = vector.broadcast %42 : vector<128x1xi1> to vector<128x32xi1>
    %44 = vector.broadcast %cst_14 : f32 to vector<128x32xf32>
    %45 = arith.select %43, %41, %44 : vector<128x32xi1>, vector<128x32xf32>
    %46 = arith.truncf %45 : vector<128x32xf32> to vector<128x32xbf16>
    %c2 = arith.constant 2 : index
    %c0_15 = arith.constant 0 : index
    %c0_16 = arith.constant 0 : index
    %47 = vector.load %arg3[%c2, %c0_15, %c0_16] : memref<9x32x64xbf16, #tpu.memory_space<vmem>>, vector<1x32x64xbf16>
    %48 = vector.shape_cast %47 : vector<1x32x64xbf16> to vector<32x64xbf16>
    %cst_17 = arith.constant dense<0.000000e+00> : vector<128x64xf32>
    %49 = tpu.matmul %46, %48, %cst_17 {dimension_numbers = #tpu.dot_dimension_numbers<[1], [0], [0], [1], [0, 0, 1, 1], [], []>} : vector<128x32xbf16>, vector<32x64xbf16>, vector<128x64xf32> -> vector<128x64xf32>
    %50 = arith.addf %40, %49 : vector<128x64xf32>
    %c1_i32_18 = arith.constant 1 : i32
    %51 = tpu.dynamic_rotate %20 by %c1_i32_18 dim 0 : vector<128x32xf32>, i32 -> vector<128x32xf32>
    %cst_19 = arith.constant 0.000000e+00 : f32
    %52 = vector.shape_cast %9 : vector<128x1xi1> to vector<128x1xi1>
    %53 = vector.broadcast %52 : vector<128x1xi1> to vector<128x32xi1>
    %54 = vector.broadcast %cst_19 : f32 to vector<128x32xf32>
    %55 = arith.select %53, %51, %54 : vector<128x32xi1>, vector<128x32xf32>
    %56 = arith.truncf %55 : vector<128x32xf32> to vector<128x32xbf16>
    %c3 = arith.constant 3 : index
    %c0_20 = arith.constant 0 : index
    %c0_21 = arith.constant 0 : index
    %57 = vector.load %arg3[%c3, %c0_20, %c0_21] : memref<9x32x64xbf16, #tpu.memory_space<vmem>>, vector<1x32x64xbf16>
    %58 = vector.shape_cast %57 : vector<1x32x64xbf16> to vector<32x64xbf16>
    %cst_22 = arith.constant dense<0.000000e+00> : vector<128x64xf32>
    %59 = tpu.matmul %56, %58, %cst_22 {dimension_numbers = #tpu.dot_dimension_numbers<[1], [0], [0], [1], [0, 0, 1, 1], [], []>} : vector<128x32xbf16>, vector<32x64xbf16>, vector<128x64xf32> -> vector<128x64xf32>
    %60 = arith.addf %50, %59 : vector<128x64xf32>
    %61 = arith.truncf %20 : vector<128x32xf32> to vector<128x32xbf16>
    %c4 = arith.constant 4 : index
    %c0_23 = arith.constant 0 : index
    %c0_24 = arith.constant 0 : index
    %62 = vector.load %arg3[%c4, %c0_23, %c0_24] : memref<9x32x64xbf16, #tpu.memory_space<vmem>>, vector<1x32x64xbf16>
    %63 = vector.shape_cast %62 : vector<1x32x64xbf16> to vector<32x64xbf16>
    %cst_25 = arith.constant dense<0.000000e+00> : vector<128x64xf32>
    %64 = tpu.matmul %61, %63, %cst_25 {dimension_numbers = #tpu.dot_dimension_numbers<[1], [0], [0], [1], [0, 0, 1, 1], [], []>} : vector<128x32xbf16>, vector<32x64xbf16>, vector<128x64xf32> -> vector<128x64xf32>
    %65 = arith.addf %60, %64 : vector<128x64xf32>
    %c127_i32 = arith.constant 127 : i32
    %66 = tpu.dynamic_rotate %20 by %c127_i32 dim 0 : vector<128x32xf32>, i32 -> vector<128x32xf32>
    %cst_26 = arith.constant 0.000000e+00 : f32
    %67 = vector.shape_cast %11 : vector<128x1xi1> to vector<128x1xi1>
    %68 = vector.broadcast %67 : vector<128x1xi1> to vector<128x32xi1>
    %69 = vector.broadcast %cst_26 : f32 to vector<128x32xf32>
    %70 = arith.select %68, %66, %69 : vector<128x32xi1>, vector<128x32xf32>
    %71 = arith.truncf %70 : vector<128x32xf32> to vector<128x32xbf16>
    %c5 = arith.constant 5 : index
    %c0_27 = arith.constant 0 : index
    %c0_28 = arith.constant 0 : index
    %72 = vector.load %arg3[%c5, %c0_27, %c0_28] : memref<9x32x64xbf16, #tpu.memory_space<vmem>>, vector<1x32x64xbf16>
    %73 = vector.shape_cast %72 : vector<1x32x64xbf16> to vector<32x64xbf16>
    %cst_29 = arith.constant dense<0.000000e+00> : vector<128x64xf32>
    %74 = tpu.matmul %71, %73, %cst_29 {dimension_numbers = #tpu.dot_dimension_numbers<[1], [0], [0], [1], [0, 0, 1, 1], [], []>} : vector<128x32xbf16>, vector<32x64xbf16>, vector<128x64xf32> -> vector<128x64xf32>
    %75 = arith.addf %65, %74 : vector<128x64xf32>
    %c121_i32 = arith.constant 121 : i32
    %76 = tpu.dynamic_rotate %20 by %c121_i32 dim 0 : vector<128x32xf32>, i32 -> vector<128x32xf32>
    %cst_30 = arith.constant 0.000000e+00 : f32
    %77 = vector.shape_cast %14 : vector<128x1xi1> to vector<128x1xi1>
    %78 = vector.broadcast %77 : vector<128x1xi1> to vector<128x32xi1>
    %79 = vector.broadcast %cst_30 : f32 to vector<128x32xf32>
    %80 = arith.select %78, %76, %79 : vector<128x32xi1>, vector<128x32xf32>
    %81 = arith.truncf %80 : vector<128x32xf32> to vector<128x32xbf16>
    %c6 = arith.constant 6 : index
    %c0_31 = arith.constant 0 : index
    %c0_32 = arith.constant 0 : index
    %82 = vector.load %arg3[%c6, %c0_31, %c0_32] : memref<9x32x64xbf16, #tpu.memory_space<vmem>>, vector<1x32x64xbf16>
    %83 = vector.shape_cast %82 : vector<1x32x64xbf16> to vector<32x64xbf16>
    %cst_33 = arith.constant dense<0.000000e+00> : vector<128x64xf32>
    %84 = tpu.matmul %81, %83, %cst_33 {dimension_numbers = #tpu.dot_dimension_numbers<[1], [0], [0], [1], [0, 0, 1, 1], [], []>} : vector<128x32xbf16>, vector<32x64xbf16>, vector<128x64xf32> -> vector<128x64xf32>
    %85 = arith.addf %75, %84 : vector<128x64xf32>
    %c120_i32 = arith.constant 120 : i32
    %86 = tpu.dynamic_rotate %20 by %c120_i32 dim 0 : vector<128x32xf32>, i32 -> vector<128x32xf32>
    %cst_34 = arith.constant 0.000000e+00 : f32
    %87 = vector.shape_cast %7 : vector<128x1xi1> to vector<128x1xi1>
    %88 = vector.broadcast %87 : vector<128x1xi1> to vector<128x32xi1>
    %89 = vector.broadcast %cst_34 : f32 to vector<128x32xf32>
    %90 = arith.select %88, %86, %89 : vector<128x32xi1>, vector<128x32xf32>
    %91 = arith.truncf %90 : vector<128x32xf32> to vector<128x32xbf16>
    %c7 = arith.constant 7 : index
    %c0_35 = arith.constant 0 : index
    %c0_36 = arith.constant 0 : index
    %92 = vector.load %arg3[%c7, %c0_35, %c0_36] : memref<9x32x64xbf16, #tpu.memory_space<vmem>>, vector<1x32x64xbf16>
    %93 = vector.shape_cast %92 : vector<1x32x64xbf16> to vector<32x64xbf16>
    %cst_37 = arith.constant dense<0.000000e+00> : vector<128x64xf32>
    %94 = tpu.matmul %91, %93, %cst_37 {dimension_numbers = #tpu.dot_dimension_numbers<[1], [0], [0], [1], [0, 0, 1, 1], [], []>} : vector<128x32xbf16>, vector<32x64xbf16>, vector<128x64xf32> -> vector<128x64xf32>
    %95 = arith.addf %85, %94 : vector<128x64xf32>
    %c119_i32 = arith.constant 119 : i32
    %96 = tpu.dynamic_rotate %20 by %c119_i32 dim 0 : vector<128x32xf32>, i32 -> vector<128x32xf32>
    %cst_38 = arith.constant 0.000000e+00 : f32
    %97 = vector.shape_cast %15 : vector<128x1xi1> to vector<128x1xi1>
    %98 = vector.broadcast %97 : vector<128x1xi1> to vector<128x32xi1>
    %99 = vector.broadcast %cst_38 : f32 to vector<128x32xf32>
    %100 = arith.select %98, %96, %99 : vector<128x32xi1>, vector<128x32xf32>
    %101 = arith.truncf %100 : vector<128x32xf32> to vector<128x32xbf16>
    %c8 = arith.constant 8 : index
    %c0_39 = arith.constant 0 : index
    %c0_40 = arith.constant 0 : index
    %102 = vector.load %arg3[%c8, %c0_39, %c0_40] : memref<9x32x64xbf16, #tpu.memory_space<vmem>>, vector<1x32x64xbf16>
    %103 = vector.shape_cast %102 : vector<1x32x64xbf16> to vector<32x64xbf16>
    %cst_41 = arith.constant dense<0.000000e+00> : vector<128x64xf32>
    %104 = tpu.matmul %101, %103, %cst_41 {dimension_numbers = #tpu.dot_dimension_numbers<[1], [0], [0], [1], [0, 0, 1, 1], [], []>} : vector<128x32xbf16>, vector<32x64xbf16>, vector<128x64xf32> -> vector<128x64xf32>
    %105 = arith.addf %95, %104 : vector<128x64xf32>
    %c0_42 = arith.constant 0 : index
    %c0_43 = arith.constant 0 : index
    %106 = vector.load %arg8[%c0_42, %c0_43] : memref<4x128xf32, #tpu.memory_space<vmem>>, vector<1x64xf32>
    %107 = vector.broadcast %106 : vector<1x64xf32> to vector<128x64xf32>
    %108 = arith.addf %105, %107 : vector<128x64xf32>
    %cst_44 = arith.constant 5.000000e-01 : f32
    %109 = vector.broadcast %cst_44 : f32 to vector<128x64xf32>
    %110 = arith.mulf %109, %108 : vector<128x64xf32>
    %cst_45 = arith.constant 4.471500e-02 : f32
    %111 = vector.broadcast %cst_45 : f32 to vector<128x64xf32>
    %112 = arith.mulf %111, %108 : vector<128x64xf32>
    %113 = arith.mulf %112, %108 : vector<128x64xf32>
    %114 = arith.mulf %113, %108 : vector<128x64xf32>
    %115 = arith.addf %108, %114 : vector<128x64xf32>
    %cst_46 = arith.constant 0.797884583 : f32
    %116 = vector.broadcast %cst_46 : f32 to vector<128x64xf32>
    %117 = arith.mulf %116, %115 : vector<128x64xf32>
    %118 = math.tanh %117 : vector<128x64xf32>
    %cst_47 = arith.constant 1.000000e+00 : f32
    %119 = vector.broadcast %cst_47 : f32 to vector<128x64xf32>
    %120 = arith.addf %119, %118 : vector<128x64xf32>
    %121 = arith.mulf %110, %120 : vector<128x64xf32>
    %c0_48 = arith.constant 0 : index
    %c0_49 = arith.constant 0 : index
    %122 = vector.load %arg4[%c0_48, %c0_49] : memref<9x64xf32, #tpu.memory_space<vmem>>, vector<9x64xf32>
    %123 = vector.extract_strided_slice %122 {offsets = [4, 0], sizes = [1, 64], strides = [1, 1]} : vector<9x64xf32> to vector<1x64xf32>
    %124 = vector.shape_cast %123 : vector<1x64xf32> to vector<64xf32>
    %125 = vector.shape_cast %124 : vector<64xf32> to vector<1x64xf32>
    %126 = vector.broadcast %125 : vector<1x64xf32> to vector<128x64xf32>
    %127 = arith.mulf %121, %126 : vector<128x64xf32>
    %c9_i32_50 = arith.constant 9 : i32
    %128 = tpu.dynamic_rotate %121 by %c9_i32_50 dim 0 : vector<128x64xf32>, i32 -> vector<128x64xf32>
    %cst_51 = arith.constant 0.000000e+00 : f32
    %129 = vector.shape_cast %12 : vector<128x1xi1> to vector<128x1xi1>
    %130 = vector.broadcast %129 : vector<128x1xi1> to vector<128x64xi1>
    %131 = vector.broadcast %cst_51 : f32 to vector<128x64xf32>
    %132 = arith.select %130, %128, %131 : vector<128x64xi1>, vector<128x64xf32>
    %133 = vector.extract_strided_slice %122 {offsets = [0, 0], sizes = [1, 64], strides = [1, 1]} : vector<9x64xf32> to vector<1x64xf32>
    %134 = vector.shape_cast %133 : vector<1x64xf32> to vector<64xf32>
    %135 = vector.shape_cast %134 : vector<64xf32> to vector<1x64xf32>
    %136 = vector.broadcast %135 : vector<1x64xf32> to vector<128x64xf32>
    %137 = arith.mulf %132, %136 : vector<128x64xf32>
    %138 = arith.addf %127, %137 : vector<128x64xf32>
    %c8_i32_52 = arith.constant 8 : i32
    %139 = tpu.dynamic_rotate %121 by %c8_i32_52 dim 0 : vector<128x64xf32>, i32 -> vector<128x64xf32>
    %cst_53 = arith.constant 0.000000e+00 : f32
    %140 = vector.shape_cast %5 : vector<128x1xi1> to vector<128x1xi1>
    %141 = vector.broadcast %140 : vector<128x1xi1> to vector<128x64xi1>
    %142 = vector.broadcast %cst_53 : f32 to vector<128x64xf32>
    %143 = arith.select %141, %139, %142 : vector<128x64xi1>, vector<128x64xf32>
    %144 = vector.extract_strided_slice %122 {offsets = [1, 0], sizes = [1, 64], strides = [1, 1]} : vector<9x64xf32> to vector<1x64xf32>
    %145 = vector.shape_cast %144 : vector<1x64xf32> to vector<64xf32>
    %146 = vector.shape_cast %145 : vector<64xf32> to vector<1x64xf32>
    %147 = vector.broadcast %146 : vector<1x64xf32> to vector<128x64xf32>
    %148 = arith.mulf %143, %147 : vector<128x64xf32>
    %149 = arith.addf %138, %148 : vector<128x64xf32>
    %c7_i32_54 = arith.constant 7 : i32
    %150 = tpu.dynamic_rotate %121 by %c7_i32_54 dim 0 : vector<128x64xf32>, i32 -> vector<128x64xf32>
    %cst_55 = arith.constant 0.000000e+00 : f32
    %151 = vector.shape_cast %13 : vector<128x1xi1> to vector<128x1xi1>
    %152 = vector.broadcast %151 : vector<128x1xi1> to vector<128x64xi1>
    %153 = vector.broadcast %cst_55 : f32 to vector<128x64xf32>
    %154 = arith.select %152, %150, %153 : vector<128x64xi1>, vector<128x64xf32>
    %155 = vector.extract_strided_slice %122 {offsets = [2, 0], sizes = [1, 64], strides = [1, 1]} : vector<9x64xf32> to vector<1x64xf32>
    %156 = vector.shape_cast %155 : vector<1x64xf32> to vector<64xf32>
    %157 = vector.shape_cast %156 : vector<64xf32> to vector<1x64xf32>
    %158 = vector.broadcast %157 : vector<1x64xf32> to vector<128x64xf32>
    %159 = arith.mulf %154, %158 : vector<128x64xf32>
    %160 = arith.addf %149, %159 : vector<128x64xf32>
    %c1_i32_56 = arith.constant 1 : i32
    %161 = tpu.dynamic_rotate %121 by %c1_i32_56 dim 0 : vector<128x64xf32>, i32 -> vector<128x64xf32>
    %cst_57 = arith.constant 0.000000e+00 : f32
    %162 = vector.shape_cast %9 : vector<128x1xi1> to vector<128x1xi1>
    %163 = vector.broadcast %162 : vector<128x1xi1> to vector<128x64xi1>
    %164 = vector.broadcast %cst_57 : f32 to vector<128x64xf32>
    %165 = arith.select %163, %161, %164 : vector<128x64xi1>, vector<128x64xf32>
    %166 = vector.extract_strided_slice %122 {offsets = [3, 0], sizes = [1, 64], strides = [1, 1]} : vector<9x64xf32> to vector<1x64xf32>
    %167 = vector.shape_cast %166 : vector<1x64xf32> to vector<64xf32>
    %168 = vector.shape_cast %167 : vector<64xf32> to vector<1x64xf32>
    %169 = vector.broadcast %168 : vector<1x64xf32> to vector<128x64xf32>
    %170 = arith.mulf %165, %169 : vector<128x64xf32>
    %171 = arith.addf %160, %170 : vector<128x64xf32>
    %c127_i32_58 = arith.constant 127 : i32
    %172 = tpu.dynamic_rotate %121 by %c127_i32_58 dim 0 : vector<128x64xf32>, i32 -> vector<128x64xf32>
    %cst_59 = arith.constant 0.000000e+00 : f32
    %173 = vector.shape_cast %11 : vector<128x1xi1> to vector<128x1xi1>
    %174 = vector.broadcast %173 : vector<128x1xi1> to vector<128x64xi1>
    %175 = vector.broadcast %cst_59 : f32 to vector<128x64xf32>
    %176 = arith.select %174, %172, %175 : vector<128x64xi1>, vector<128x64xf32>
    %177 = vector.extract_strided_slice %122 {offsets = [5, 0], sizes = [1, 64], strides = [1, 1]} : vector<9x64xf32> to vector<1x64xf32>
    %178 = vector.shape_cast %177 : vector<1x64xf32> to vector<64xf32>
    %179 = vector.shape_cast %178 : vector<64xf32> to vector<1x64xf32>
    %180 = vector.broadcast %179 : vector<1x64xf32> to vector<128x64xf32>
    %181 = arith.mulf %176, %180 : vector<128x64xf32>
    %182 = arith.addf %171, %181 : vector<128x64xf32>
    %c121_i32_60 = arith.constant 121 : i32
    %183 = tpu.dynamic_rotate %121 by %c121_i32_60 dim 0 : vector<128x64xf32>, i32 -> vector<128x64xf32>
    %cst_61 = arith.constant 0.000000e+00 : f32
    %184 = vector.shape_cast %14 : vector<128x1xi1> to vector<128x1xi1>
    %185 = vector.broadcast %184 : vector<128x1xi1> to vector<128x64xi1>
    %186 = vector.broadcast %cst_61 : f32 to vector<128x64xf32>
    %187 = arith.select %185, %183, %186 : vector<128x64xi1>, vector<128x64xf32>
    %188 = vector.extract_strided_slice %122 {offsets = [6, 0], sizes = [1, 64], strides = [1, 1]} : vector<9x64xf32> to vector<1x64xf32>
    %189 = vector.shape_cast %188 : vector<1x64xf32> to vector<64xf32>
    %190 = vector.shape_cast %189 : vector<64xf32> to vector<1x64xf32>
    %191 = vector.broadcast %190 : vector<1x64xf32> to vector<128x64xf32>
    %192 = arith.mulf %187, %191 : vector<128x64xf32>
    %193 = arith.addf %182, %192 : vector<128x64xf32>
    %c120_i32_62 = arith.constant 120 : i32
    %194 = tpu.dynamic_rotate %121 by %c120_i32_62 dim 0 : vector<128x64xf32>, i32 -> vector<128x64xf32>
    %cst_63 = arith.constant 0.000000e+00 : f32
    %195 = vector.shape_cast %7 : vector<128x1xi1> to vector<128x1xi1>
    %196 = vector.broadcast %195 : vector<128x1xi1> to vector<128x64xi1>
    %197 = vector.broadcast %cst_63 : f32 to vector<128x64xf32>
    %198 = arith.select %196, %194, %197 : vector<128x64xi1>, vector<128x64xf32>
    %199 = vector.extract_strided_slice %122 {offsets = [7, 0], sizes = [1, 64], strides = [1, 1]} : vector<9x64xf32> to vector<1x64xf32>
    %200 = vector.shape_cast %199 : vector<1x64xf32> to vector<64xf32>
    %201 = vector.shape_cast %200 : vector<64xf32> to vector<1x64xf32>
    %202 = vector.broadcast %201 : vector<1x64xf32> to vector<128x64xf32>
    %203 = arith.mulf %198, %202 : vector<128x64xf32>
    %204 = arith.addf %193, %203 : vector<128x64xf32>
    %c119_i32_64 = arith.constant 119 : i32
    %205 = tpu.dynamic_rotate %121 by %c119_i32_64 dim 0 : vector<128x64xf32>, i32 -> vector<128x64xf32>
    %cst_65 = arith.constant 0.000000e+00 : f32
    %206 = vector.shape_cast %15 : vector<128x1xi1> to vector<128x1xi1>
    %207 = vector.broadcast %206 : vector<128x1xi1> to vector<128x64xi1>
    %208 = vector.broadcast %cst_65 : f32 to vector<128x64xf32>
    %209 = arith.select %207, %205, %208 : vector<128x64xi1>, vector<128x64xf32>
    %210 = vector.extract_strided_slice %122 {offsets = [8, 0], sizes = [1, 64], strides = [1, 1]} : vector<9x64xf32> to vector<1x64xf32>
    %211 = vector.shape_cast %210 : vector<1x64xf32> to vector<64xf32>
    %212 = vector.shape_cast %211 : vector<64xf32> to vector<1x64xf32>
    %213 = vector.broadcast %212 : vector<1x64xf32> to vector<128x64xf32>
    %214 = arith.mulf %209, %213 : vector<128x64xf32>
    %215 = arith.addf %204, %214 : vector<128x64xf32>
    %c1_66 = arith.constant 1 : index
    %c0_67 = arith.constant 0 : index
    %216 = vector.load %arg8[%c1_66, %c0_67] : memref<4x128xf32, #tpu.memory_space<vmem>>, vector<1x64xf32>
    %217 = vector.broadcast %216 : vector<1x64xf32> to vector<128x64xf32>
    %218 = arith.addf %215, %217 : vector<128x64xf32>
    %219 = arith.truncf %218 : vector<128x64xf32> to vector<128x64xbf16>
    %c0_68 = arith.constant 0 : index
    %c0_69 = arith.constant 0 : index
    %220 = vector.load %arg5[%c0_68, %c0_69] : memref<64x64xbf16, #tpu.memory_space<vmem>>, vector<64x64xbf16>
    %cst_70 = arith.constant dense<0.000000e+00> : vector<128x64xf32>
    %221 = tpu.matmul %219, %220, %cst_70 {dimension_numbers = #tpu.dot_dimension_numbers<[1], [0], [0], [1], [0, 0, 1, 1], [], []>} : vector<128x64xbf16>, vector<64x64xbf16>, vector<128x64xf32> -> vector<128x64xf32>
    %c2_71 = arith.constant 2 : index
    %c0_72 = arith.constant 0 : index
    %222 = vector.load %arg8[%c2_71, %c0_72] : memref<4x128xf32, #tpu.memory_space<vmem>>, vector<1x64xf32>
    %223 = vector.broadcast %222 : vector<1x64xf32> to vector<128x64xf32>
    %224 = arith.addf %221, %223 : vector<128x64xf32>
    %cst_73 = arith.constant 5.000000e-01 : f32
    %225 = vector.broadcast %cst_73 : f32 to vector<128x64xf32>
    %226 = arith.mulf %225, %224 : vector<128x64xf32>
    %cst_74 = arith.constant 4.471500e-02 : f32
    %227 = vector.broadcast %cst_74 : f32 to vector<128x64xf32>
    %228 = arith.mulf %227, %224 : vector<128x64xf32>
    %229 = arith.mulf %228, %224 : vector<128x64xf32>
    %230 = arith.mulf %229, %224 : vector<128x64xf32>
    %231 = arith.addf %224, %230 : vector<128x64xf32>
    %cst_75 = arith.constant 0.797884583 : f32
    %232 = vector.broadcast %cst_75 : f32 to vector<128x64xf32>
    %233 = arith.mulf %232, %231 : vector<128x64xf32>
    %234 = math.tanh %233 : vector<128x64xf32>
    %cst_76 = arith.constant 1.000000e+00 : f32
    %235 = vector.broadcast %cst_76 : f32 to vector<128x64xf32>
    %236 = arith.addf %235, %234 : vector<128x64xf32>
    %237 = arith.mulf %226, %236 : vector<128x64xf32>
    %238 = vector.extract_strided_slice %121 {offsets = [0, 0], sizes = [64, 64], strides = [1, 1]} : vector<128x64xf32> to vector<64x64xf32>
    %cst_77 = arith.constant dense<0.000000e+00> : vector<64xf32>
    %239 = vector.multi_reduction <add>, %238, %cst_77 [0] : vector<64x64xf32> to vector<64xf32>
    %240 = vector.shape_cast %239 : vector<64xf32> to vector<1x64xf32>
    %cst_78 = arith.constant 6.400000e+01 : f32
    %241 = vector.broadcast %cst_78 : f32 to vector<1x64xf32>
    %242 = arith.divf %240, %241 : vector<1x64xf32>
    %243 = vector.extract_strided_slice %121 {offsets = [64, 0], sizes = [64, 64], strides = [1, 1]} : vector<128x64xf32> to vector<64x64xf32>
    %cst_79 = arith.constant dense<0.000000e+00> : vector<64xf32>
    %244 = vector.multi_reduction <add>, %243, %cst_79 [0] : vector<64x64xf32> to vector<64xf32>
    %245 = vector.shape_cast %244 : vector<64xf32> to vector<1x64xf32>
    %cst_80 = arith.constant 6.400000e+01 : f32
    %246 = vector.broadcast %cst_80 : f32 to vector<1x64xf32>
    %247 = arith.divf %245, %246 : vector<1x64xf32>
    %248 = tpu.concatenate %242, %247 in 0 : vector<1x64xf32>, vector<1x64xf32> -> vector<2x64xf32>
    %249 = arith.truncf %248 : vector<2x64xf32> to vector<2x64xbf16>
    %c0_81 = arith.constant 0 : index
    %c0_82 = arith.constant 0 : index
    %250 = vector.load %arg7[%c0_81, %c0_82] : memref<64x128xbf16, #tpu.memory_space<vmem>>, vector<64x128xbf16>
    %cst_83 = arith.constant dense<0.000000e+00> : vector<2x128xf32>
    %251 = tpu.matmul %249, %250, %cst_83 {dimension_numbers = #tpu.dot_dimension_numbers<[1], [0], [0], [1], [0, 0, 1, 1], [], []>} : vector<2x64xbf16>, vector<64x128xbf16>, vector<2x128xf32> -> vector<2x128xf32>
    %252 = vector.extract_strided_slice %251 {offsets = [0, 0], sizes = [1, 128], strides = [1, 1]} : vector<2x128xf32> to vector<1x128xf32>
    %253 = vector.shape_cast %252 : vector<1x128xf32> to vector<1x128xf32>
    %254 = vector.broadcast %253 : vector<1x128xf32> to vector<64x128xf32>
    %255 = vector.extract_strided_slice %251 {offsets = [1, 0], sizes = [1, 128], strides = [1, 1]} : vector<2x128xf32> to vector<1x128xf32>
    %256 = vector.shape_cast %255 : vector<1x128xf32> to vector<1x128xf32>
    %257 = vector.broadcast %256 : vector<1x128xf32> to vector<64x128xf32>
    %258 = tpu.concatenate %254, %257 in 0 : vector<64x128xf32>, vector<64x128xf32> -> vector<128x128xf32>
    %259 = arith.truncf %237 : vector<128x64xf32> to vector<128x64xbf16>
    %c0_84 = arith.constant 0 : index
    %c0_85 = arith.constant 0 : index
    %260 = vector.load %arg6[%c0_84, %c0_85] : memref<64x128xbf16, #tpu.memory_space<vmem>>, vector<64x128xbf16>
    %cst_86 = arith.constant dense<0.000000e+00> : vector<128x128xf32>
    %261 = tpu.matmul %259, %260, %cst_86 {dimension_numbers = #tpu.dot_dimension_numbers<[1], [0], [0], [1], [0, 0, 1, 1], [], []>} : vector<128x64xbf16>, vector<64x128xbf16>, vector<128x128xf32> -> vector<128x128xf32>
    %262 = arith.addf %261, %258 : vector<128x128xf32>
    %c3_87 = arith.constant 3 : index
    %c0_88 = arith.constant 0 : index
    %263 = vector.load %arg8[%c3_87, %c0_88] : memref<4x128xf32, #tpu.memory_space<vmem>>, vector<1x128xf32>
    %264 = vector.broadcast %263 : vector<1x128xf32> to vector<128x128xf32>
    %265 = arith.addf %262, %264 : vector<128x128xf32>
    %c0_89 = arith.constant 0 : index
    %c0_90 = arith.constant 0 : index
    %266 = vector.load %arg1[%c0_89, %c0_90] : memref<128x128xf32, #tpu.memory_space<vmem>>, vector<128x128xf32>
    %267 = arith.addf %265, %266 : vector<128x128xf32>
    %c0_91 = arith.constant 0 : index
    %c0_92 = arith.constant 0 : index
    %268 = vector.load %arg9[%c0_91, %c0_92] : memref<128x128xf32, #tpu.memory_space<vmem>>, vector<128x128xf32>
    tpu.vector_store %arg9[%c0_91, %c0_92], %267 {strides = array<i32>} : memref<128x128xf32, #tpu.memory_space<vmem>>, vector<128x128xf32>,
    return
  }
  func.func @transform_0(%arg0: i32) -> (i32, i32) {
    %c0_i32 = arith.constant 0 : i32
    %c0_i32_0 = arith.constant 0 : i32
    %c0_i32_1 = arith.constant 0 : i32
    return %c0_i32, %c0_i32_0 : i32, i32
  }
  func.func @transform_1(%arg0: i32) -> (i32, i32) {
    %c0_i32 = arith.constant 0 : i32
    %c0_i32_0 = arith.constant 0 : i32
    %c0_i32_1 = arith.constant 0 : i32
    return %c0_i32, %c0_i32_0 : i32, i32
  }
  func.func @transform_2(%arg0: i32) -> (i32, i32, i32) {
    %c0_i32 = arith.constant 0 : i32
    %c0_i32_0 = arith.constant 0 : i32
    %c0_i32_1 = arith.constant 0 : i32
    %c0_i32_2 = arith.constant 0 : i32
    return %c0_i32, %c0_i32_0, %c0_i32_1 : i32, i32, i32
  }
  func.func @transform_3(%arg0: i32) -> (i32, i32) {
    %c0_i32 = arith.constant 0 : i32
    %c0_i32_0 = arith.constant 0 : i32
    %c0_i32_1 = arith.constant 0 : i32
    return %c0_i32, %c0_i32_0 : i32, i32
  }
  func.func @transform_4(%arg0: i32) -> (i32, i32) {
    %c0_i32 = arith.constant 0 : i32
    %c0_i32_0 = arith.constant 0 : i32
    %c0_i32_1 = arith.constant 0 : i32
    return %c0_i32, %c0_i32_0 : i32, i32
  }
  func.func @transform_5(%arg0: i32) -> (i32, i32) {
    %c0_i32 = arith.constant 0 : i32
    %c0_i32_0 = arith.constant 0 : i32
    %c0_i32_1 = arith.constant 0 : i32
    return %c0_i32, %c0_i32_0 : i32, i32
  }
  func.func @transform_6(%arg0: i32) -> (i32, i32) {
    %c0_i32 = arith.constant 0 : i32
    %c0_i32_0 = arith.constant 0 : i32
    %c0_i32_1 = arith.constant 0 : i32
    return %c0_i32, %c0_i32_0 : i32, i32
  }
  func.func @transform_7(%arg0: i32) -> (i32, i32) {
    %c0_i32 = arith.constant 0 : i32
    %c0_i32_0 = arith.constant 0 : i32
    %c0_i32_1 = arith.constant 0 : i32
    return %c0_i32, %c0_i32_0 : i32, i32
  }
  func.func @transform_8(%arg0: i32) -> (i32, i32) {
    %c0_i32 = arith.constant 0 : i32
    %c0_i32_0 = arith.constant 0 : i32
    %c0_i32_1 = arith.constant 0 : i32
    return %c0_i32, %c0_i32_0 : i32, i32
  }
}

</mosaic_0001>

<bundles_post_ra>
// kernel: tpu_custom_call.1
= control target key start
LH: loop header
LB: loop body
LE: loop exit
PB: predicated region body
PF: predicated region fallthrough
CT: control target
= control target key end

     0   :  { %13 = vsyncpa [#allocation3], 0  ;;  %s5272_s0 = inlined_call_operand.hbm [shape: f32[128,128], index: 0, kind: input, shape index: {}]   ;;  %s5273_s1 = inlined_call_operand.vmem [shape: bf16[128,64], index: 1, kind: input, shape index: {}]   ;;  %s5274_s2 = inlined_call_operand.hbm [shape: bf16[9,32,64], index: 2, kind: input, shape index: {}]   ;;  %s5275_s3 = inlined_call_operand.hbm [shape: f32[9,64], index: 3, kind: input, shape index: {}]   ;;  %s5276_s4 = inlined_call_operand.vmem [shape: bf16[64,64], index: 4, kind: input, shape index: {}]   ;;  %s5277_s5 = inlined_call_operand.vmem [shape: bf16[64,128], index: 5, kind: input, shape index: {}]   ;;  %s5278_s6 = inlined_call_operand.vmem [shape: bf16[64,128], index: 6, kind: input, shape index: {}]   ;;  %s5279_s7 = inlined_call_operand.vmem [shape: f32[4,128], index: 7, kind: input, shape index: {}]   ;;  %s5280_s8 = inlined_call_operand.hbm [shape: f32[128,128], index: 8, kind: output, shape index: {}]  }
   0x1   :  { %14 = vsyncpa [#allocation6], 0 }
   0x2   :  { %15 = vsyncpa [#allocation4], 0  ;;  %s3895_s27 = smov [#allocation5]   ;;  %s3801_s9 = scalar_lea.hbm %s5274_s2, 2304 }
   0x3   :  { %s35_s28 = sshll.u32 %s3895_s27, 4  ;;  %p3802_p0 = scmp.ne.s32.totalorder %s5274_s2, %s3801_s9  ;;  %s36_s28 = int_to_ptr.vmem [resolvable:$true] %s35_s28 }
   0x4   :  { %p3805_p1 = scmp.lt.u32.totalorder %s3801_s9, %s5274_s2 }
   0x6   :  { %p3807_p2 = pnand %p3805_p1, %p3802_p0 }
   0x8   :  { %3810 = shalt.err (!%p3807_p2)
}
   0x9   :  { %s3811_s14 = scalar_lea.vmem %s36_s28, 2304  ;;  %p3816_p4 = scmp.lt.s32.totalorder %s36_s28, %s36_s28 }
   0xa   :  { %p3812_p3 = scmp.ne.s32.totalorder %s36_s28, %s3811_s14  ;;  %p3817_p5 = scmp.lt.s32.totalorder %s3811_s14, %s3811_s14 }
   0xc   :  { %p3818_p6 = por %p3817_p5, %p3816_p4 }
   0xe   :  { %p3819_p7 = pnand %p3818_p6, %p3812_p3 }
  0x10   :  { %3822 = shalt.err (!%p3819_p7)
}
  0x11   :  { %s3896_s15 = smov 64   ;;  %s3897_s16 = smov 4  }
  0x12   :  { %41 = dma.hbm_to_vmem [thread:$0]  %s5274_s2, 2304, %s36_s28, [#allocation6], %s3896_s15, %s3896_s15, %s3897_s16  }
  0x13   :  { %s3898_s19 = smov [#allocation2]   ;;  %s3823_s23 = scalar_lea.hbm %s5272_s0, 2048 }
  0x14   :  { %s21_s20 = sshll.u32 %s3898_s19, 4  ;;  %p3824_p8 = scmp.ne.s32.totalorder %s5272_s0, %s3823_s23  ;;  %s22_s20 = int_to_ptr.vmem [resolvable:$true] %s21_s20 }
  0x15   :  { %p3827_p9 = scmp.lt.u32.totalorder %s3823_s23, %s5272_s0 }
  0x17   :  { %p3829_p10 = pnand %p3827_p9, %p3824_p8 }
  0x19   :  { %3832 = shalt.err (!%p3829_p10)
}
  0x1a   :  { %s3833_s29 = scalar_lea.vmem %s22_s20, 2048  ;;  %p3838_p12 = scmp.lt.s32.totalorder %s22_s20, %s22_s20 }
  0x1b   :  { %p3834_p11 = scmp.ne.s32.totalorder %s22_s20, %s3833_s29  ;;  %p3839_p13 = scmp.lt.s32.totalorder %s3833_s29, %s3833_s29 }
  0x1d   :  { %p3840_p0 = por %p3839_p13, %p3838_p12 }
  0x1f   :  { %p3841_p1 = pnand %p3840_p0, %p3834_p11 }
  0x21   :  { %3844 = shalt.err (!%p3841_p1)
}
  0x22   :  { %s3899_s2 = smov 128   ;;  %s3900_s28 = smov 8  }
  0x23   :  { %27 = dma.hbm_to_vmem [thread:$0]  %s5272_s0, 2048, %s22_s20, [#allocation3], %s3899_s2, %s3899_s2, %s3900_s28  }
  0x24   :  { %s3901_s10 = smov [#allocation7]   ;;  %s3845_s14 = scalar_lea.hbm %s5275_s3, 256 }
  0x25   :  { %s47_s11 = sshll.u32 %s3901_s10, 4  ;;  %p3846_p2 = scmp.ne.s32.totalorder %s5275_s3, %s3845_s14  ;;  %s48_s11 = int_to_ptr.vmem [resolvable:$true] %s47_s11 }
  0x26   :  { %p3849_p3 = scmp.lt.u32.totalorder %s3845_s14, %s5275_s3 }
  0x28   :  { %p3851_p4 = pnand %p3849_p3, %p3846_p2 }
  0x2a   :  { %3854 = shalt.err (!%p3851_p4)
}
  0x2b   :  { %s3855_s19 = scalar_lea.vmem %s48_s11, 256  ;;  %p3860_p6 = scmp.lt.s32.totalorder %s48_s11, %s48_s11 }
  0x2c   :  { %p3856_p5 = scmp.ne.s32.totalorder %s48_s11, %s3855_s19  ;;  %p3861_p7 = scmp.lt.s32.totalorder %s3855_s19, %s3855_s19 }
  0x2e   :  { %p3862_p8 = por %p3861_p7, %p3860_p6 }
  0x30   :  { %p3863_p9 = pnand %p3862_p8, %p3856_p5 }
  0x32   :  { %3866 = shalt.err (!%p3863_p9)
}
  0x33   :  { %53 = dma.hbm_to_vmem [thread:$0]  %s5275_s3, 256, %s48_s11, [#allocation6], %s3899_s2, %s3899_s2, %s3900_s28  }
  0x34   :  { %3889 = dma.done.wait [#allocation3], 2048  }
  0x35   :  { %3890 = vsyncadd [#allocation3], 4294965248 }
  0x36   :  { %3891 = dma.done.wait [#allocation6], 2560  }
  0x37   :  { %3892 = vsyncadd [#allocation6], 4294964736  ;;  %v72_v0 = vlaneseq  ;;  %v3682_v1 = vld [vmem:[#allocation5] sm:$0xff]   ;;  %v3684_v4 = vld [vmem:[#allocation5 + $0x8] sm:$0xff]   ;;  %vm187_vm0 = vcmask 261120   ;;  %v5283_v33 = vmov 0.0  }
  0x38   :  { %v3994_v3 = vld [vmem:[#allocation5 + $0x20] sm:$0xff]   ;;  %3252 = vmatprep.subr.bf16.mxu1 %v3682_v1  ;;  %v3997_v5 = vld [vmem:[#allocation5 + $0x28] sm:$0xff]   ;;  %v4005_v8 = vld [vmem:[#allocation2 + $0x10] sm:$0xff]  ;;  %vm2356_vm5 = vcmask 523264   ;;  %vm3903_vm6 = vmmov 0   ;;  %vm2667_vm7 = vcmask 1040384  }
  0x39   :  { %v3992_v2 = vshrl.u32 %v72_v0, 7  ;;  %3324 = vmatprep.subr.bf16.mxu0 %v3994_v3  ;;  %3253 = vmatpush3.bf16.msra.mxu1 %v3682_v1  ;;  %v4001_v6 = vld [vmem:[#allocation2] sm:$0xff]  ;;  %v4003_v7 = vld [vmem:[#allocation2 + $0x8] sm:$0xff]  ;;  %v4010_v9 = vld [vmem:[#allocation2 + $0x18] sm:$0xff]  ;;  %v118_v13 = vrot.slane %v4005_v8, 7  ;;  %v618_v21 = vrot.slane %v4005_v8, 1 }
  0x3a   :  { %3325 = vmatpush3.bf16.msra.mxu0 %v3994_v3  ;;  %3254 = vmatprep.subr.bf16.mxu1 %v3684_v4  ;;  %v4012_v10 = vld [vmem:[#allocation2 + $0x78] sm:$0xff]  ;;  %v116_v11 = vrot.slane %v4001_v6, 7  ;;  %v117_v12 = vrot.slane %v4003_v7, 7  ;;  %v119_v14 = vrot.slane %v4010_v9, 7  ;;  %v4020_v16 = vld [vmem:[#allocation2 + $0x20] sm:$0xff]  ;;  %v616_v17 = vrot.slane %v4001_v6, 1 }
  0x3b   :  { %vm74_vm1 = vcmp.ge.s32.totalorder %v3992_v2, 1  ;;  %vm132_vm2 = vcmp.lt.s32.totalorder %v3992_v2, 1  ;;  %vm75_vm3 = vcmp.le.s32.totalorder %v3992_v2, 6  ;;  %3326 = vmatprep.subr.bf16.mxu0 %v3997_v5  ;;  %vm632_vm4 = vcmp.lt.s32.totalorder %v3992_v2, 7  ;;  %v3686_v23 = vld [vmem:[%s5273_s1] sm:$0xff]   ;;  %v3687_v24 = vld [vmem:[#allocation5 + $0x30] sm:$0xff]  }
  0x3c   :  { %v131_v15 = vrot.slane %v4012_v10, 7  ;;  %v617_v18 = vrot.slane %v4003_v7, 1  ;;  %v144_v19 = vsel %vm132_vm2, %v117_v12, %v118_v13  ;;  %v145_v20 = vsel %vm132_vm2, %v116_v11, %v117_v12  ;;  %v3688_v41 = vld [vmem:[%s5273_s1 + $0x8] sm:$0xff]   ;;  %v4078_v43 = vld [vmem:[#allocation2 + $0x30] sm:$0xff]  ;;  %v3689_v52 = vld [vmem:[#allocation5 + $0x38] sm:$0xff]  }
  0x3d   :  { %3255 = vmatpush3.bf16.msra.mxu1 %v3684_v4  ;;  %v619_v22 = vrot.slane %v4010_v9, 1  ;;  %v143_v25 = vsel %vm132_vm2, %v118_v13, %v119_v14  ;;  %v150_v27 = vsel %vm74_vm1, %v145_v20, 0.0  ;;  %v4044_v28 = vsel %vm74_vm1, %v144_v19, 0.0  ;;  %v4076_v42 = vld [vmem:[#allocation2 + $0x28] sm:$0xff]  ;;  %v3690_v56 = vld [vmem:[%s5273_s1 + $0x10] sm:$0xff]   ;;  %v4118_v58 = vld [vmem:[#allocation2 + $0x38] sm:$0xff] }
  0x3e   :  { %3327 = vmatpush3.bf16.msra.mxu0 %v3997_v5  ;;  %v146_v26 = vsel %vm132_vm2, %v131_v15, %v116_v11  ;;  %v4050_v30 = vsel %vm74_vm1, %v143_v25, 0.0  ;;  %v4053_v31 = vpack.c.bf16 %v4044_v28, %v150_v27  ;;  %v620_v32 = vrot.slane %v4020_v16, 1  ;;  %3272 = vmatprep.subr.bf16.mxu1 %v3686_v23  ;;  %v4130_v62 = vld [vmem:[#allocation2 + $0x40] sm:$0xff]  ;;  %v4133_v0 = vld [vmem:[#allocation2 + $0x48] sm:$0xff]  ;;  %v4135_v1 = vld [vmem:[#allocation2 + $0x50] sm:$0xff] }
  0x3f   :  { %v149_v29 = vsel %vm74_vm1, %v146_v26, 0.0  ;;  %3344 = vmatprep.subr.bf16.mxu0 %v3687_v24  ;;  %v644_v36 = vsel %vm632_vm4, %v618_v21, %v619_v22  ;;  %v645_v38 = vsel %vm632_vm4, %v617_v18, %v618_v21  ;;  %v646_v39 = vsel %vm632_vm4, %v616_v17, %v617_v18  ;;  %v3692_v18 = vld [vmem:[#allocation5 + $0x40] sm:$0xff]   ;;  %v3691_v20 = vld [vmem:[%s5273_s1 + $0x18] sm:$0xff]  }
  0x40   :  { %v163_v34 = vpack.c.bf16 %v149_v29, %v5283_v33  ;;  %v829_v35 = vpack.c.bf16 %v150_v27, %v149_v29  ;;  %v643_v37 = vsel %vm632_vm4, %v619_v22, %v620_v32  ;;  %v4071_v40 = vsel %vm75_vm3, %v644_v36, 0.0  ;;  %v4165_v26 = vld [vmem:[#allocation2 + $0x60] sm:$0xff]  ;;  %v4167_v27 = vld [vmem:[#allocation2 + $0x68] sm:$0xff]  ;;  %v4169_v29 = vld [vmem:[#allocation2 + $0x70] sm:$0xff] }
  0x41   :  { %v4083_v44 = vsel %vm75_vm3, %v646_v39, 0.0  ;;  %v4087_v45 = vsel %vm75_vm3, %v645_v38, 0.0  ;;  %v4091_v46 = vsel %vm75_vm3, %v643_v37, 0.0  ;;  %v120_v47 = vrot.slane %v4020_v16, 7 }
  0x42   :  { %3256 = vmatprep.mubr.msk.bf16.mxu1 %vm187_vm0, %v163_v34  ;;  %v663_v48 = vpack.c.bf16 %v4083_v44, %v5283_v33  ;;  %v4098_v49 = vpack.c.bf16 %v4071_v40, %v4087_v45  ;;  %v1149_v50 = vpack.c.bf16 %v4087_v45, %v4083_v44  ;;  %v1150_v51 = vpack.c.bf16 %v4091_v46, %v4071_v40 }
  0x43   :  { %3257 = vmatmul.mubr.msk.bf16.vlgmr.msra.gmra.mrb[0].mxu1 %vm187_vm0, %v4053_v31  ;;  %v142_v53 = vsel %vm132_vm2, %v119_v14, %v120_v47  ;;  %v121_v54 = vrot.slane %v4076_v42, 7  ;;  %v122_v55 = vrot.slane %v4078_v43, 7  ;;  %v123_v63 = vrot.slane %v4118_v58, 7 }
  0x44   :  { %3273 = vmatpush3.bf16.msra.mxu1 %v3686_v23  ;;  %3328 = vmatprep.mubr.msk.bf16.mxu0 %vm187_vm0, %v663_v48  ;;  %v4116_v57 = vsel %vm74_vm1, %v142_v53, 0.0  ;;  %v124_v12 = vrot.slane %v4130_v62, 7  ;;  %v125_v13 = vrot.slane %v4133_v0, 7  ;;  %v126_v19 = vrot.slane %v4135_v1, 7  ;;  %v4159_v23 = vld [vmem:[#allocation2 + $0x58] sm:$0xff] }
  0x45   :  { %3274 = vmatprep.subr.bf16.mxu1 %v3688_v41  ;;  %3329 = vmatmul.mubr.msk.bf16.vlgmr.msra.gmra.mrb[0].mxu0 %vm187_vm0, %v4098_v49  ;;  %v4124_v59 = vpack.c.bf16 %v4116_v57, %v4050_v30  ;;  %v140_v60 = vsel %vm132_vm2, %v121_v54, %v122_v55  ;;  %v141_v61 = vsel %vm132_vm2, %v120_v47, %v121_v54  ;;  %v127_v36 = vrot.slane %v4159_v23, 7 }
  0x46   :  { %3345 = vmatpush3.bf16.msra.mxu0 %v3687_v24  ;;  %v154_v4 = vsel %vm74_vm1, %v141_v61, 0.0  ;;  %v4141_v11 = vsel %vm74_vm1, %v140_v60, 0.0  ;;  %3348 = vmatprep.mubr.msk.bf16.mxu0 %vm187_vm0, %v829_v35  ;;  %v139_v21 = vsel %vm132_vm2, %v123_v63, %v124_v12  ;;  %v138_v22 = vsel %vm132_vm2, %v124_v12, %v125_v13  ;;  %v3693_v35 = vld [vmem:[%s5273_s1 + $0x20] sm:$0xff]  }
  0x47   :  { %3346 = vmatprep.subr.bf16.mxu0 %v3689_v52  ;;  %v4147_v14 = vpack.c.bf16 %v4141_v11, %v154_v4  ;;  %3260 = vmatprep.mubr.msk.bf16.mxu1 %vm187_vm0, %v4124_v59  ;;  %v156_v24 = vsel %vm74_vm1, %v139_v21, 0.0  ;;  %v137_v25 = vsel %vm132_vm2, %v125_v13, %v126_v19  ;;  %v128_v37 = vrot.slane %v4165_v26, 7  ;;  %v3694_v13 = vld [vmem:[%s5273_s1 + $0x28] sm:$0xff]  }
  0x48   :  { %3275 = vmatpush3.bf16.msra.mxu1 %v3688_v41  ;;  %v167_v34 = vpack.c.bf16 %v156_v24, %v5283_v33  ;;  %v157_v38 = vsel %vm74_vm1, %v138_v22, 0.0  ;;  %v158_v39 = vsel %vm74_vm1, %v137_v25, 0.0  ;;  %v136_v47 = vsel %vm132_vm2, %v126_v19, %v127_v36 }
  0x49   :  { %3276 = vmatprep.subr.bf16.mxu1 %v3690_v56  ;;  %v135_v41 = vsel %vm132_vm2, %v127_v36, %v128_v37  ;;  %v129_v48 = vrot.slane %v4167_v27, 7  ;;  %v830_v53 = vpack.c.bf16 %v4050_v30, %v4044_v28  ;;  %v159_v54 = vsel %vm74_vm1, %v136_v47, 0.0 }
  0x4a   :  { %3347 = vmatpush3.bf16.msra.mxu0 %v3689_v52  ;;  %v130_v52 = vrot.slane %v4169_v29, 7  ;;  %v4196_v60 = vpack.c.bf16 %v158_v39, %v157_v38  ;;  %v831_v61 = vpack.c.bf16 %v154_v4, %v4116_v57  ;;  %v826_v12 = vsel %vm132_vm2, %v122_v55, %v123_v63  ;;  %v3698_v4 = vld [vmem:[#allocation5 + $0x50] sm:$0xff]  }
  0x4b   :  { %3261 = vmatmul.mubr.msk.bf16.gmra.mrb[4].mxu1 %vm187_vm0, %v4147_v14  ;;  %3364 = vmatprep.subr.bf16.mxu0 %v3692_v18  ;;  %v134_v19 = vsel %vm132_vm2, %v128_v37, %v129_v48  ;;  %v4215_v55 = vsel %vm74_vm1, %v826_v12, 0.0  ;;  %v833_v25 = vpack.c.bf16 %v157_v38, %v156_v24  ;;  %v834_v24 = vpack.c.bf16 %v159_v54, %v158_v39 }
  0x4c   :  { %3277 = vmatpush3.bf16.msra.mxu1 %v3690_v56  ;;  %3264 = vmatprep.mubr.msk.bf16.mxu1 %vm187_vm0, %v167_v34  ;;  %v160_v56 = vsel %vm74_vm1, %v135_v41, 0.0  ;;  %v133_v30 = vsel %vm132_vm2, %v129_v48, %v130_v52  ;;  %v161_v57 = vsel %vm74_vm1, %v134_v19, 0.0  ;;  %v832_v21 = vpack.c.bf16 %v4215_v55, %v4141_v11  ;;  %v3696_v34 = vld [vmem:[%s5273_s1 + $0x38] sm:$0xff]   ;;  %v3699_v11 = vld [vmem:[#allocation5 + $0x10] sm:$0xff]  }
  0x4d   :  { %3278 = vmatprep.subr.bf16.mxu1 %v3691_v20  ;;  %v4204_v28 = vpack.c.bf16 %v160_v56, %v159_v54  ;;  %v162_v63 = vsel %vm74_vm1, %v133_v30, 0.0  ;;  %v93_v36 = vpack.c.bf16 %v4010_v9, %v4005_v8  ;;  %v835_v37 = vpack.c.bf16 %v161_v57, %v160_v56  ;;  %v3700_v41 = vld [vmem:[#allocation5 + $0x18] sm:$0xff]  }
  0x4e   :  { %v4229_v22 = vpack.c.bf16 %v162_v63, %v161_v57  ;;  %v825_v38 = vsel %vm132_vm2, %v130_v52, %v131_v15  ;;  %v94_v47 = vpack.c.bf16 %v4076_v42, %v4020_v16  ;;  %v95_v48 = vpack.c.bf16 %v4118_v58, %v4078_v43  ;;  %v3701_v56 = vld [vmem:[#allocation5 + $0x58] sm:$0xff]  }
  0x4f   :  { %v4251_v39 = vsel %vm74_vm1, %v825_v38, 0.0  ;;  %v96_v52 = vpack.c.bf16 %v4133_v0, %v4130_v62  ;;  %v98_v54 = vpack.c.bf16 %v4167_v27, %v4165_v26  ;;  %v99_v12 = vpack.c.bf16 %v4012_v10, %v4169_v29 }
  0x50   :  { %3279 = vmatpush3.bf16.msra.mxu1 %v3691_v20  ;;  %v3697_v20 = vld [vmem:[#allocation5 + $0x48] sm:$0xff]   ;;  %v836_v15 = vpack.c.bf16 %v4251_v39, %v162_v63  ;;  %v4277_v30 = vpack.c.bf16 %v4005_v8, %v4003_v7  ;;  %v4281_v19 = vpack.c.bf16 %v4020_v16, %v4010_v9  ;;  %v622_v8 = vrot.slane %v4078_v43, 1 }
  0x51   :  { %3280 = vmatprep.subr.bf16.mxu1 %v3693_v35  ;;  %3349 = vmatmul.mubr.msk.bf16.vlgmr.msra.gmra.mrb[0].mxu0 %vm187_vm0, %v830_v53  ;;  %v97_v53 = vpack.c.bf16 %v4159_v23, %v4135_v1  ;;  %v4295_v9 = vpack.c.bf16 %v4078_v43, %v4076_v42  ;;  %v625_v43 = vrot.slane %v4133_v0, 1  ;;  %v626_v63 = vrot.slane %v4135_v1, 1 }
  0x52   :  { %3365 = vmatpush3.bf16.msra.mxu0 %v3692_v18  ;;  %3352 = vmatprep.mubr.msk.bf16.mxu0 %vm187_vm0, %v831_v61  ;;  %v3695_v18 = vld [vmem:[%s5273_s1 + $0x30] sm:$0xff]   ;;  %v3702_v61 = vld [vmem:[#allocation5 + $0x60] sm:$0xff]   ;;  %v4324_v44 = vpack.c.bf16 %v4135_v1, %v4133_v0  ;;  %v4364_v38 = vpack.c.bf16 %v4169_v29, %v4167_v27 }
  0x53   :  { %3265 = vmatmul.mubr.msk.bf16.gmra.mrb[8].mxu1 %vm187_vm0, %v4196_v60  ;;  %3366 = vmatprep.subr.bf16.mxu0 %v3697_v20 }
  0x54   :  { %3281 = vmatpush3.bf16.msra.mxu1 %v3693_v35  ;;  %3268 = vmatprep.mubr.msk.bf16.mxu1 %vm187_vm0, %v4204_v28  ;;  %v92_v35 = vpack.c.bf16 %v4003_v7, %v4001_v6  ;;  %v621_v7 = vrot.slane %v4076_v42, 1  ;;  %v624_v42 = vrot.slane %v4130_v62, 1 }
  0x55   :  { %3282 = vmatprep.subr.bf16.mxu1 %v3694_v13 }
  0x56   :  { %3367 = vmatpush3.bf16.msra.mxu0 %v3697_v20  ;;  %v458_v20 = vpack.c.bf16 %v4130_v62, %v5283_v33  ;;  %v642_v57 = vsel %vm632_vm4, %v620_v32, %v621_v7 }
  0x57   :  { %3384 = vmatprep.subr.bf16.mxu0 %v3698_v4  ;;  %v653_v16 = vsel %vm75_vm3, %v642_v57, 0.0 }
  0x58   :  { %3283 = vmatpush3.bf16.msra.mxu1 %v3694_v13  ;;  %v454_v13 = vpack.c.bf16 %v4001_v6, %v5283_v33 }
  0x59   :  { %3284 = vmatprep.subr.bf16.mxu1 %v3695_v18  ;;  %3353 = vmatmul.mubr.msk.bf16.gmra.mrb[4].mxu0 %vm187_vm0, %v832_v21  ;;  %v639_v21 = vsel %vm632_vm4, %v624_v42, %v625_v43 }
  0x5a   :  { %3356 = vmatprep.mubr.msk.bf16.mxu0 %vm187_vm0, %v833_v25  ;;  %v3703_v25 = vld [vmem:[#allocation5 + $0x68] sm:$0xff]   ;;  %v656_v40 = vsel %vm75_vm3, %v639_v21, 0.0 }
  0x5b   :  { %3269 = vmatmul.mubr.msk.bf16.gmra.mrb[12].mxu1 %vm187_vm0, %v4229_v22  ;;  %v3709_v21 = vld [vmem:[%s5276_s4 + $0x8] sm:$0xff]  }
  0x5c   :  { %3285 = vmatpush3.bf16.msra.mxu1 %v3695_v18  ;;  %3288 = vmatprep.mubr.bf16.mxu1 %v92_v35  ;;  %v638_v18 = vsel %vm632_vm4, %v625_v43, %v626_v63 }
  0x5d   :  { %3286 = vmatprep.subr.bf16.mxu1 %v3696_v34 }
  0x60   :  { %3287 = vmatpush3.bf16.msra.mxu1 %v3696_v34  ;;  %v627_v34 = vrot.slane %v4159_v23, 1 }
  0x61   :  { %3304 = vmatprep.subr.bf16.mxu1 %v3699_v11  ;;  %3357 = vmatmul.mubr.msk.bf16.gmra.mrb[8].mxu0 %vm187_vm0, %v834_v24  ;;  %v629_v24 = vrot.slane %v4167_v27, 1 }
  0x62   :  { %3360 = vmatprep.mubr.msk.bf16.mxu0 %vm187_vm0, %v835_v37 }
  0x63   :  { %3289 = vmatmul.mubr.bf16.vlgmr.msra.gmra.mrb[0].mxu1 %v93_v36 }
  0x64   :  { %3292 = vmatprep.mubr.bf16.mxu1 %v94_v47  ;;  %3305 = vmatpush3.bf16.msra.mxu1 %v3699_v11  ;;  %v3704_v11 = vld [vmem:[#allocation5 + $0x70] sm:$0xff]  }
  0x65   :  { %3306 = vmatprep.subr.bf16.mxu1 %v3700_v41 }
  0x68   :  { %3307 = vmatpush3.bf16.msra.mxu1 %v3700_v41 }
  0x69   :  { %3524 = vmatprep.subr.bf16.mxu1 %v3994_v3  ;;  %3361 = vmatmul.mubr.msk.bf16.gmra.mrb[12].mxu0 %vm187_vm0, %v836_v15 }
  0x6a   :  { %3368 = vmatprep.mubr.msk.bf16.mxu0 %vm187_vm0, %v92_v35  ;;  %v628_v35 = vrot.slane %v4165_v26, 1 }
  0x6b   :  { %3293 = vmatmul.mubr.bf16.gmra.mrb[4].mxu1 %v95_v48 }
  0x6c   :  { %3296 = vmatprep.mubr.bf16.mxu1 %v96_v52 }
  0x71   :  { %3369 = vmatmul.mubr.msk.bf16.vlgmr.msra.gmra.mrb[0].mxu0 %vm187_vm0, %v93_v36  ;;  %v630_v36 = vrot.slane %v4169_v29, 1 }
  0x72   :  { %3385 = vmatpush3.bf16.msra.mxu0 %v3698_v4  ;;  %3372 = vmatprep.mubr.msk.bf16.mxu0 %vm187_vm0, %v94_v47  ;;  %v4332_v4 = vpack.c.bf16 %v4165_v26, %v4159_v23  ;;  %v636_v47 = vsel %vm632_vm4, %v627_v34, %v628_v35  ;;  %v637_v23 = vsel %vm632_vm4, %v626_v63, %v627_v34 }
  0x73   :  { %3297 = vmatmul.mubr.bf16.gmra.mrb[8].mxu1 %v97_v53  ;;  %3386 = vmatprep.subr.bf16.mxu0 %v3701_v56  ;;  %v4371_v26 = vpack.c.bf16 %v653_v16, %v4091_v46  ;;  %v634_v15 = vsel %vm632_vm4, %v629_v24, %v630_v36  ;;  %v658_v27 = vsel %vm75_vm3, %v637_v23, 0.0  ;;  %v659_v46 = vsel %vm75_vm3, %v636_v47, 0.0 }
  0x74   :  { %3300 = vmatprep.mubr.bf16.mxu1 %v98_v54 }
  0x76   :  { %3387 = vmatpush3.bf16.msra.mxu0 %v3701_v56 }
  0x77   :  { %3404 = vmatprep.subr.bf16.mxu0 %v3702_v61 }
  0x79   :  { %3373 = vmatmul.mubr.msk.bf16.gmra.mrb[4].mxu0 %vm187_vm0, %v95_v48  ;;  %v635_v48 = vsel %vm632_vm4, %v628_v35, %v629_v24  ;;  %v4502_v35 = vld [vmem:[%s5279_s7] ss:$0 sm:$0xff] }
  0x7a   :  { %3376 = vmatprep.mubr.msk.bf16.mxu0 %vm187_vm0, %v96_v52  ;;  %v660_v29 = vsel %vm75_vm3, %v635_v48, 0.0  ;;  %v661_v52 = vsel %vm75_vm3, %v634_v15, 0.0 }
  0x7b   :  { %3301 = vmatmul.mubr.bf16.gmra.mrb[12].mxu1 %v99_v12  ;;  %v669_v57 = vpack.c.bf16 %v660_v29, %v659_v46 }
  0x7c   :  { %3308 = vmatprep.mubr.msk.bf16.mxu1 %vm187_vm0, %v454_v13 }
  0x81   :  { %3377 = vmatmul.mubr.msk.bf16.gmra.mrb[8].mxu0 %vm187_vm0, %v97_v53  ;;  %v631_v53 = vrot.slane %v4012_v10, 1 }
  0x82   :  { %3380 = vmatprep.mubr.msk.bf16.mxu0 %vm187_vm0, %v98_v54  ;;  %v1154_v54 = vpack.c.bf16 %v659_v46, %v658_v27  ;;  %v2111_v46 = vsub.s32 3, %v3992_v2 }
  0x83   :  { %3309 = vmatmul.mubr.msk.bf16.vlgmr.msra.gmra.mrb[0].mxu1 %vm187_vm0, %v4277_v30  ;;  %v1146_v13 = vsel %vm632_vm4, %v631_v53, %v616_v17 }
  0x84   :  { %3312 = vmatprep.mubr.msk.bf16.mxu1 %vm187_vm0, %v4281_v19  ;;  %3526 = vmatpush3.bf16.msra.mxu1 %v3994_v3  ;;  %v641_v3 = vsel %vm632_vm4, %v621_v7, %v622_v8  ;;  %v667_v7 = vpack.c.bf16 %v656_v40, %v5283_v33 }
  0x85   :  { %3525 = vmatprep.subr.bf16.mxu1 %v3997_v5  ;;  %v654_v32 = vsel %vm75_vm3, %v641_v3, 0.0 }
  0x86   :  { %v1151_v45 = vpack.c.bf16 %v654_v32, %v653_v16  ;;  %v1311_v16 = vpack.c.bf16 %v5283_v33, %v4215_v55 }
  0x88   :  { %3527 = vmatpush3.bf16.msra.mxu1 %v3997_v5  ;;  %v623_v5 = vrot.slane %v4118_v58, 1 }
  0x89   :  { %3381 = vmatmul.mubr.msk.bf16.gmra.mrb[12].mxu0 %vm187_vm0, %v99_v12  ;;  %v633_v12 = vsel %vm632_vm4, %v630_v36, %v631_v53 }
  0x8a   :  { %3388 = vmatprep.mubr.msk.bf16.mxu0 %vm187_vm0, %v1149_v50  ;;  %v640_v50 = vsel %vm632_vm4, %v622_v8, %v623_v5  ;;  %v1145_v62 = vsel %vm632_vm4, %v623_v5, %v624_v42  ;;  %v662_v8 = vsel %vm75_vm3, %v633_v12, 0.0  ;;  %v3705_v5 = vld [vmem:[#allocation5 + $0x78] sm:$0xff]   ;;  %v3706_v42 = vld [vmem:[#allocation5 + $0x80] sm:$0xff]  }
  0x8b   :  { %3313 = vmatmul.mubr.msk.bf16.gmra.mrb[4].mxu1 %vm187_vm0, %v4295_v9  ;;  %v655_v0 = vsel %vm75_vm3, %v640_v50, 0.0  ;;  %v4348_v1 = vsel %vm75_vm3, %v1145_v62, 0.0  ;;  %v670_v17 = vpack.c.bf16 %v662_v8, %v661_v52 }
  0x8c   :  { %3316 = vmatprep.mubr.msk.bf16.mxu1 %vm187_vm0, %v458_v20  ;;  %v1152_v37 = vpack.c.bf16 %v4348_v1, %v655_v0  ;;  %v666_v56 = vpack.c.bf16 %v655_v0, %v654_v32  ;;  %v1148_v20 = vsel %vm75_vm3, %v1146_v13, 0.0  ;;  %v3711_v0 = vld [vmem:[%s5276_s4 + $0x18] sm:$0xff]  }
  0x8d   :  { %v1156_v6 = vpack.c.bf16 %v1148_v20, %v662_v8 }
  0x91   :  { %3389 = vmatmul.mubr.msk.bf16.vlgmr.msra.gmra.mrb[0].mxu0 %vm187_vm0, %v1150_v51  ;;  %v657_v51 = vsel %vm75_vm3, %v638_v18, 0.0  ;;  %v3708_v18 = vld [vmem:[%s5276_s4] sm:$0xff]  }
  0x92   :  { %3405 = vmatpush3.bf16.msra.mxu0 %v3702_v61  ;;  %3392 = vmatprep.mubr.msk.bf16.mxu0 %vm187_vm0, %v1151_v45  ;;  %v1153_v41 = vpack.c.bf16 %v657_v51, %v656_v40  ;;  %v1155_v61 = vpack.c.bf16 %v661_v52, %v660_v29  ;;  %v668_v3 = vpack.c.bf16 %v658_v27, %v657_v51  ;;  %v1890_v40 = vld [vmem:[#allocation7] sm:$0xff]  ;;  %v5281_v51 = vsub.s32 1, %v3992_v2 }
  0x93   :  { %3317 = vmatmul.mubr.msk.bf16.gmra.mrb[8].mxu1 %vm187_vm0, %v4324_v44  ;;  %3406 = vmatprep.subr.bf16.mxu0 %v3703_v25  ;;  %v2187_v29 = vsub.s32 6, %v3992_v2 }
  0x94   :  { %3320 = vmatprep.mubr.msk.bf16.mxu1 %vm187_vm0, %v4332_v4  ;;  %3464 = vmatprep.subr.bf16.mxu1 %v3708_v18  ;;  %v4512_v23 = vrot.slane %v1890_v40, %v5281_v51 }
  0x96   :  { %3407 = vmatpush3.bf16.msra.mxu0 %v3703_v25  ;;  %v3710_v25 = vld [vmem:[%s5276_s4 + $0x10] sm:$0xff]  }
  0x97   :  { %3424 = vmatprep.subr.bf16.mxu0 %v3704_v11 }
  0x99   :  { %3393 = vmatmul.mubr.msk.bf16.gmra.mrb[4].mxu0 %vm187_vm0, %v1152_v37  ;;  %v1894_v37 = vsub.s32 4, %v3992_v2 }
  0x9a   :  { %3396 = vmatprep.mubr.msk.bf16.mxu0 %vm187_vm0, %v1153_v41 }
  0x9b   :  { %3321 = vmatmul.mubr.msk.bf16.gmra.mrb[12].mxu1 %vm187_vm0, %v4364_v38  ;;  %v4523_v13 = vrot.slane %v1890_v40, %v1894_v37 }
  0x9c   :  { %3332 = vmatprep.mubr.msk.bf16.mxu1 %vm187_vm0, %v4371_v26 }
  0xa1   :  { %3397 = vmatmul.mubr.msk.bf16.gmra.mrb[8].mxu0 %vm187_vm0, %v1154_v54 }
  0xa2   :  { %3400 = vmatprep.mubr.msk.bf16.mxu0 %vm187_vm0, %v1155_v61 }
  0xa3   :  { %3333 = vmatmul.mubr.msk.bf16.vlgmr.msra.gmra.mrb[4].mxu1 %vm187_vm0, %v666_v56 }
  0xa4   :  { %3336 = vmatprep.mubr.msk.bf16.mxu1 %vm187_vm0, %v667_v7  ;;  %3465 = vmatpush3.bf16.msra.mxu1 %v3708_v18 }
  0xa5   :  { %3466 = vmatprep.subr.bf16.mxu1 %v3709_v21 }
  0xa8   :  { %3467 = vmatpush3.bf16.msra.mxu1 %v3709_v21 }
  0xa9   :  { %3401 = vmatmul.mubr.msk.bf16.gmra.mrb[12].mxu0 %vm187_vm0, %v1156_v6  ;;  %3468 = vmatprep.subr.bf16.mxu1 %v3710_v25  ;;  %v4532_v6 = vmul.f32 0.0, %v4512_v23 }
  0xaa   :  { %3408 = vmatprep.mubr.msk.bf16.mxu0 %vm187_vm0, %v4053_v31  ;;  %v1312_v31 = vpack.c.bf16 %v5283_v33, %v4251_v39 }
  0xab   :  { %3337 = vmatmul.mubr.msk.bf16.gmra.mrb[8].mxu1 %vm187_vm0, %v668_v3 }
  0xac   :  { %3340 = vmatprep.mubr.msk.bf16.mxu1 %vm187_vm0, %v669_v57  ;;  %3469 = vmatpush3.bf16.msra.mxu1 %v3710_v25 }
  0xad   :  { %3470 = vmatprep.subr.bf16.mxu1 %v3711_v0 }
  0xb0   :  { %3471 = vmatpush3.bf16.msra.mxu1 %v3711_v0 }
  0xb1   :  { %3409 = vmatmul.mubr.msk.bf16.vlgmr.msra.gmra.mrb[0].mxu0 %vm187_vm0, %v4124_v59  ;;  %v3707_v59 = vld [vmem:[#allocation5 + $0x88] sm:$0xff]   ;;  %3488 = vmatprep.subr.bf16.mxu1 %v5283_v33 }
  0xb2   :  { %3425 = vmatpush3.bf16.msra.mxu0 %v3704_v11  ;;  %3412 = vmatprep.mubr.msk.bf16.mxu0 %vm187_vm0, %v4147_v14  ;;  %v1449_v14 = vpack.c.bf16 %v5283_v33, %v4118_v58  ;;  %v1587_v58 = vpack.c.bf16 %v5283_v33, %v4348_v1  ;;  %v5282_v1 = vsub.s32 0, %v3992_v2  ;;  %v2072_v11 = vsub.s32 2, %v3992_v2 }
  0xb3   :  { %3341 = vmatmul.mubr.msk.bf16.gmra.mrb[12].mxu1 %vm187_vm0, %v670_v17  ;;  %3426 = vmatprep.subr.bf16.mxu0 %v3705_v5 }
  0xb4   :  { %v4519_v54 = vrot.slane %v1890_v40, %v2072_v11 }
  0xb6   :  { %3427 = vmatpush3.bf16.msra.mxu0 %v3705_v5  ;;  %v4536_v5 = vrot.slane %v1890_v40, %v2111_v46 }
  0xb7   :  { %3444 = vmatprep.subr.bf16.mxu0 %v3706_v42 }
  0xb9   :  { %3413 = vmatmul.mubr.msk.bf16.gmra.mrb[4].mxu0 %vm187_vm0, %v1311_v16 }
  0xba   :  { %3416 = vmatprep.mubr.msk.bf16.mxu0 %vm187_vm0, %v4196_v60  ;;  %v1450_v60 = vpack.c.bf16 %v5283_v33, %v4012_v10  ;;  %v1588_v10 = vpack.c.bf16 %v5283_v33, %v1148_v20 }
  0xc1   :  { %3417 = vmatmul.mubr.msk.bf16.gmra.mrb[8].mxu0 %vm187_vm0, %v4204_v28 }
  0xc2   :  { %3420 = vmatprep.mubr.msk.bf16.mxu0 %vm187_vm0, %v4229_v22 }
  0xc9   :  { %3421 = vmatmul.mubr.msk.bf16.gmra.mrb[12].mxu0 %vm187_vm0, %v1312_v31 }
  0xca   :  { %3428 = vmatprep.mubr.msk.bf16.mxu0 %vm187_vm0, %v4277_v30 }
  0xd1   :  { %3429 = vmatmul.mubr.msk.bf16.vlgmr.msra.gmra.mrb[0].mxu0 %vm187_vm0, %v4281_v19 }
  0xd2   :  { %3445 = vmatpush3.bf16.msra.mxu0 %v3706_v42  ;;  %3432 = vmatprep.mubr.msk.bf16.mxu0 %vm187_vm0, %v4295_v9  ;;  %v4538_v42 = vrot.slane %v1890_v40, %v2187_v29 }
  0xd3   :  { %3446 = vmatprep.subr.bf16.mxu0 %v3707_v59 }
  0xd6   :  { %3447 = vmatpush3.bf16.msra.mxu0 %v3707_v59 }
  0xd9   :  { %3433 = vmatmul.mubr.msk.bf16.gmra.mrb[4].mxu0 %vm187_vm0, %v1449_v14  ;;  %v4542_v14 = vmul.f32 0.0, %v4519_v54 }
  0xda   :  { %3436 = vmatprep.mubr.msk.bf16.mxu0 %vm187_vm0, %v4324_v44 }
  0xe1   :  { %3437 = vmatmul.mubr.msk.bf16.gmra.mrb[8].mxu0 %vm187_vm0, %v4332_v4 }
  0xe2   :  { %3440 = vmatprep.mubr.msk.bf16.mxu0 %vm187_vm0, %v4364_v38  ;;  %v4508_v38 = vrot.slane %v1890_v40, %v5282_v1 }
  0xe4   :  { %v4526_v7 = vmul.f32 0.0, %v4508_v38 }
  0xe9   :  { %3441 = vmatmul.mubr.msk.bf16.gmra.mrb[12].mxu0 %vm187_vm0, %v1450_v60 }
  0xea   :  { %3448 = vmatprep.mubr.msk.bf16.mxu0 %vm187_vm0, %v4098_v49 }
  0xf1   :  { %3449 = vmatmul.mubr.msk.bf16.vlgmr.msra.gmra.mrb[0].mxu0 %vm187_vm0, %v4371_v26  ;;  %v2222_v26 = vsub.s32 7, %v3992_v2 }
  0xf2   :  { %3452 = vmatprep.mubr.msk.bf16.mxu0 %vm187_vm0, %v666_v56  ;;  %v2151_v56 = vsub.s32 5, %v3992_v2 }
  0xf4   :  { %v4544_v60 = vrot.slane %v1890_v40, %v2151_v56 }
  0xf9   :  { %3453 = vmatmul.mubr.msk.bf16.gmra.mrb[4].mxu0 %vm187_vm0, %v1587_v58 }
  0xfa   :  { %3456 = vmatprep.mubr.msk.bf16.mxu0 %vm187_vm0, %v668_v3  ;;  %v4534_v3 = vrot.slane %v1890_v40, %v2222_v26  ;;  %v4560_v26 = vld [vmem:[#allocation7 + $0x8] ss:$0 sm:$0xff] }
  0xfb   :  { %v4563_v46 = vmul.f32 0.0, %v4560_v26 }
  0xfc   :  { %v4553_v0 = vmul.f32 0.0, %v4534_v3 }
 0x101   :  { %3457 = vmatmul.mubr.msk.bf16.gmra.mrb[8].mxu0 %vm187_vm0, %v669_v57 }
 0x102   :  { %3460 = vmatprep.mubr.msk.bf16.mxu0 %vm187_vm0, %v670_v17 }
 0x109   :  { %3461 = vmatmul.mubr.msk.bf16.gmra.mrb[12].mxu0 %vm187_vm0, %v1588_v10 }
 0x156   :  { %v3310_v49 = vpop.f32.mrb[0].mxu1 }
 0x157   :  { %v537_v28 = vpop.f32.mrb[1].mxu1 }
 0x158   :  { %v3311_v55 = vpop.f32.mrb[2].mxu1 }
 0x159   :  { %v540_v22 = vpop.f32.mrb[3].mxu1 }
 0x176   :  { %v4460_v39 = vpop.f32.mrb[4].mxu1 }
 0x177   :  { %v4462_v30 = vpop.f32.mrb[5].mxu1 }
 0x178   :  { %v4464_v19 = vpop.f32.mrb[6].mxu1 }
 0x179   :  { %v4466_v9 = vpop.f32.mrb[7].mxu1 }
 0x17e   :  { %v4468_v32 = vpop.f32.mrb[8].mxu1 }
 0x17f   :  { %v4470_v43 = vpop.f32.mrb[9].mxu1 }
 0x180   :  { %v4472_v63 = vpop.f32.mrb[10].mxu1 }
 0x181   :  { %v4474_v44 = vpop.f32.mrb[11].mxu1 }
 0x186   :  { %v4476_v45 = vpop.f32.mrb[12].mxu1 }
 0x187   :  { %v4478_v50 = vpop.f32.mrb[13].mxu1 }
 0x188   :  { %v4480_v62 = vpop.f32.mrb[14].mxu1 }
 0x189   :  { %v4482_v4 = vpop.f32.mrb[15].mxu1 }
 0x1c4   :  { %v3450_v34 = vpop.f32.mrb[0].mxu0 }
 0x1c5   :  { %v3528_v24 = vadd.f32 %v3450_v34, %v3310_v49  ;;  %v1646_v36 = vpop.f32.mrb[1].mxu0 }
 0x1c6   :  { %v3529_v41 = vadd.f32 %v1646_v36, %v537_v28  ;;  %v3451_v47 = vpop.f32.mrb[2].mxu0 }
 0x1c7   :  { %v1732_v15 = vadd.f32 %v3528_v24, %v4502_v35  ;;  %v3530_v48 = vadd.f32 %v3451_v47, %v3311_v55  ;;  %v1649_v27 = vpop.f32.mrb[3].mxu0  ;;  %v4548_v55 = vmul.f32 0.0, %v4538_v42 }
 0x1c8   :  { %v1730_v52 = vadd.f32 %v3529_v41, %v4502_v35  ;;  %v3531_v53 = vadd.f32 %v1649_v27, %v540_v22 }
 0x1c9   :  { %v1764_v61 = vmul.f32 0.044715, %v1732_v15  ;;  %v1733_v12 = vadd.f32 %v3530_v48, %v4502_v35  ;;  %v4565_v29 = vmul.f32 0.5, %v1732_v15 }
 0x1ca   :  { %v1762_v8 = vmul.f32 0.044715, %v1730_v52  ;;  %v4529_v20 = vadd.f32 %v3531_v53, %v4502_v35 }
 0x1cb   :  { %v1780_v57 = vmul.f32 %v1764_v61, %v1732_v15  ;;  %v1765_v17 = vmul.f32 0.044715, %v1733_v12 }
 0x1cc   :  { %v1778_v16 = vmul.f32 %v1762_v8, %v1730_v52  ;;  %v1763_v31 = vmul.f32 0.044715, %v4529_v20  ;;  %v3454_v59 = vpop.f32.mrb[4].mxu0 }
 0x1cd   :  { %v1796_v58 = vmul.f32 %v1780_v57, %v1732_v15  ;;  %v1781_v10 = vmul.f32 %v1765_v17, %v1733_v12  ;;  %v3532_v49 = vadd.f32 %v3454_v59, %v4460_v39  ;;  %v1662_v28 = vpop.f32.mrb[5].mxu0  ;;  %v1746_v59 = vmul.f32 0.5, %v1730_v52 }
 0x1ce   :  { %v1794_v22 = vmul.f32 %v1778_v16, %v1730_v52  ;;  %v1779_v18 = vmul.f32 %v1763_v31, %v4529_v20  ;;  %v3533_v21 = vadd.f32 %v1662_v28, %v4462_v30  ;;  %v3455_v25 = vpop.f32.mrb[6].mxu0 }
 0x1cf   :  { %v1812_v34 = vadd.f32 %v1796_v58, %v1732_v15  ;;  %v1797_v40 = vmul.f32 %v1781_v10, %v1733_v12  ;;  %v1736_v11 = vadd.f32 %v3532_v49, %v4502_v35  ;;  %v3534_v24 = vadd.f32 %v3455_v25, %v4464_v19  ;;  %v1665_v39 = vpop.f32.mrb[7].mxu0 }
 0x1d0   :  { %v1810_v36 = vadd.f32 %v1794_v22, %v1730_v52  ;;  %v1795_v37 = vmul.f32 %v1779_v18, %v4529_v20  ;;  %v1734_v41 = vadd.f32 %v3533_v21, %v4502_v35  ;;  %v3535_v47 = vadd.f32 %v1665_v39, %v4466_v9 }
 0x1d1   :  { %v1828_v30 = vmul.f32 0.7978846, %v1812_v34  ;;  %v1813_v48 = vadd.f32 %v1797_v40, %v1733_v12  ;;  %v1768_v27 = vmul.f32 0.044715, %v1736_v11  ;;  %v1737_v57 = vadd.f32 %v3534_v24, %v4502_v35 }
 0x1d2   :  { %v1826_v53 = vmul.f32 0.7978846, %v1810_v36  ;;  %v1811_v19 = vadd.f32 %v1795_v37, %v4529_v20  ;;  %v1766_v56 = vmul.f32 0.044715, %v1734_v41  ;;  %v4570_v16 = vadd.f32 %v3535_v47, %v4502_v35 }
 0x1d3   :  { %3720 = vtanh.f32 %v1828_v30  ;;  %v1829_v61 = vmul.f32 0.7978846, %v1813_v48  ;;  %v1784_v8 = vmul.f32 %v1768_v27, %v1736_v11  ;;  %v1769_v58 = vmul.f32 0.044715, %v1737_v57 }
 0x1d4   :  { %3722 = vtanh.f32 %v1826_v53  ;;  %v1827_v9 = vmul.f32 0.7978846, %v1811_v19  ;;  %v1782_v17 = vmul.f32 %v1766_v56, %v1734_v41  ;;  %v3458_v31 = vpop.f32.mrb[8].mxu0  ;;  %v4572_v49 = vmul.f32 0.5, %v1733_v12 }
 0x1d5   :  { %3724 = vtanh.f32 %v1829_v61  ;;  %v1800_v15 = vmul.f32 %v1784_v8, %v1736_v11  ;;  %v1678_v10 = vpop.f32.mrb[9].mxu0  ;;  %v1767_v22 = vmul.f32 0.044715, %v4570_v16  ;;  %v1785_v25 = vmul.f32 %v1769_v58, %v1737_v57 }
 0x1d6   :  { %3726 = vtanh.f32 %v1827_v9  ;;  %v1798_v28 = vmul.f32 %v1782_v17, %v1734_v41  ;;  %v3459_v18 = vpop.f32.mrb[10].mxu0  ;;  %v3536_v34 = vadd.f32 %v3458_v31, %v4468_v32  ;;  %v3537_v40 = vadd.f32 %v1678_v10, %v4470_v43 }
 0x1d7   :  { %v1816_v21 = vadd.f32 %v1800_v15, %v1736_v11  ;;  %v1681_v24 = vpop.f32.mrb[11].mxu0  ;;  %v1783_v39 = vmul.f32 %v1767_v22, %v4570_v16  ;;  %v3538_v36 = vadd.f32 %v3459_v18, %v4472_v63  ;;  %v1801_v47 = vmul.f32 %v1785_v25, %v1737_v57 }
 0x1d8   :  { %v1814_v52 = vadd.f32 %v1798_v28, %v1734_v41  ;;  %v3539_v12 = vadd.f32 %v1681_v24, %v4474_v44  ;;  %v4581_v30 = vadd.f32 %v3536_v34, %v4502_v35  ;;  %v4584_v48 = vadd.f32 %v3537_v40, %v4502_v35 }
 0x1d9   :  { %v1832_v37 = vmul.f32 0.7978846, %v1816_v21  ;;  %v1747_v32 = vmul.f32 0.5, %v4529_v20  ;;  %v1799_v43 = vmul.f32 %v1783_v39, %v4570_v16  ;;  %v4589_v53 = vadd.f32 %v3538_v36, %v4502_v35 }
 0x1da   :  { %v1830_v27 = vmul.f32 0.7978846, %v1814_v52  ;;  %v4591_v19 = vmul.f32 0.5, %v1736_v11  ;;  %v1817_v63 = vadd.f32 %v1801_v47, %v1737_v57  ;;  %v1772_v44 = vmul.f32 0.044715, %v4581_v30 }
 0x1db   :  { %3728 = vtanh.f32 %v1832_v37  ;;  %v4594_v56 = vmul.f32 0.5, %v1734_v41  ;;  %v1815_v61 = vadd.f32 %v1799_v43, %v4570_v16  ;;  %v1770_v8 = vmul.f32 0.044715, %v4584_v48 }
 0x1dc   :  { %3730 = vtanh.f32 %v1830_v27  ;;  %v3462_v20 = vpop.f32.mrb[12].mxu0  ;;  %v4598_v17 = vmul.f32 0.5, %v1737_v57  ;;  %v1833_v31 = vmul.f32 0.7978846, %v1817_v63  ;;  %v1788_v15 = vmul.f32 %v1772_v44, %v4581_v30 }
 0x1dd   :  { %v3721_v9 = vpop.eup %3720  ;;  %v1773_v11 = vmul.f32 0.044715, %v4589_v53  ;;  %v1694_v58 = vpop.f32.mrb[13].mxu0  ;;  %v1831_v22 = vmul.f32 0.7978846, %v1815_v61  ;;  %v1786_v41 = vmul.f32 %v1770_v8, %v4584_v48  ;;  %v1739_v18 = vadd.f32 %v3539_v12, %v4502_v35 }
 0x1de   :  { %v3723_v10 = vpop.eup %3722  ;;  %v1860_v28 = vadd.f32 1.0, %v3721_v9  ;;  %v3463_v21 = vpop.f32.mrb[14].mxu0  ;;  %3732 = vtanh.f32 %v1833_v31  ;;  %v1804_v57 = vmul.f32 %v1788_v15, %v4581_v30  ;;  %v1751_v44 = vmul.f32 0.5, %v4570_v16 }
 0x1df   :  { %v3725_v25 = vpop.eup %3724  ;;  %v1858_v34 = vadd.f32 1.0, %v3723_v10  ;;  %v1789_v40 = vmul.f32 %v1773_v11, %v4589_v53  ;;  %v1697_v24 = vpop.f32.mrb[15].mxu0  ;;  %3734 = vtanh.f32 %v1831_v22  ;;  %v1802_v37 = vmul.f32 %v1786_v41, %v4584_v48 }
 0x1e0   :  { %v3727_v52 = vpop.eup %3726  ;;  %v4607_v39 = vmul.f32 %v1860_v28, %v4565_v29  ;;  %v1861_v36 = vadd.f32 1.0, %v3725_v25  ;;  %v1820_v27 = vadd.f32 %v1804_v57, %v4581_v30  ;;  %v1771_v29 = vmul.f32 0.044715, %v1739_v18 }
 0x1e1   :  { %v4610_v47 = vmul.f32 %v1858_v34, %v1746_v59  ;;  %v1859_v12 = vadd.f32 1.0, %v3727_v52  ;;  %v1805_v43 = vmul.f32 %v1789_v40, %v4589_v53  ;;  %v1818_v61 = vadd.f32 %v1802_v37, %v4584_v48 }
 0x1e2   :  { %v2625_v63 = vsel %vm2356_vm5, %v4607_v39, 0.0  ;;  %v4619_v8 = vmul.f32 %v1861_v36, %v4572_v49  ;;  %v1836_v59 = vmul.f32 0.7978846, %v1820_v27  ;;  %v1787_v10 = vmul.f32 %v1771_v29, %v1739_v18 }
 0x1e3   :  { %5294 = vst [vmem:[#allocation12_spill] sm:$0xff] %v4610_v47  ;;  %v4621_v9 = vmul.f32 %v1859_v12, %v1747_v32  ;;  %v1821_v31 = vadd.f32 %v1805_v43, %v4589_v53  ;;  %v2622_v15 = vsel %vm2356_vm5, %v4610_v47, 0.0  ;;  %v1834_v11 = vmul.f32 0.7978846, %v1818_v61 }
 0x1e4   :  { %v3540_v28 = vadd.f32 %v3462_v20, %v4476_v45  ;;  %3736 = vtanh.f32 %v1836_v59  ;;  %v3541_v49 = vadd.f32 %v1694_v58, %v4478_v50  ;;  %v1803_v57 = vmul.f32 %v1787_v10, %v1739_v18 }
 0x1e5   :  { %v3729_v22 = vpop.eup %3728  ;;  %v2623_v16 = vsel %vm2356_vm5, %v4621_v9, 0.0  ;;  %v1837_v41 = vmul.f32 0.7978846, %v1821_v31  ;;  %3738 = vtanh.f32 %v1834_v11  ;;  %v1756_v20 = vmul.f32 0.5, %v4581_v30 }
 0x1e6   :  { %v3731_v32 = vpop.eup %3730  ;;  %v2624_v25 = vadd.f32 %v2623_v16, %v2622_v15  ;;  %v1864_v34 = vadd.f32 1.0, %v3729_v22  ;;  %v1744_v52 = vadd.f32 %v3540_v28, %v4502_v35  ;;  %v1742_v36 = vadd.f32 %v3541_v49, %v4502_v35 }
 0x1e7   :  { %v1862_v40 = vadd.f32 1.0, %v3731_v32  ;;  %3740 = vtanh.f32 %v1837_v41  ;;  %v1819_v37 = vadd.f32 %v1803_v57, %v1739_v18  ;;  %v3542_v12 = vadd.f32 %v3463_v21, %v4480_v62 }
 0x1e8   :  { %v4632_v45 = vadd.f32 %v2625_v63, %v2624_v25  ;;  %v3733_v27 = vpop.eup %3732  ;;  %v1754_v58 = vmul.f32 0.5, %v4584_v48  ;;  %v4641_v43 = vmul.f32 0.5, %v4589_v53  ;;  %v1776_v61 = vmul.f32 0.044715, %v1744_v52 }
 0x1e9   :  { %v4637_v50 = vmul.f32 %v1862_v40, %v4594_v56  ;;  %v3735_v29 = vpop.eup %3734  ;;  %v1865_v59 = vadd.f32 1.0, %v3733_v27  ;;  %v1835_v31 = vmul.f32 0.7978846, %v1819_v37  ;;  %v1774_v63 = vmul.f32 0.044715, %v1742_v36 }
 0x1ea   :  { %5295 = vst [vmem:[#allocation13_spill] sm:$0xff] %v4632_v45  ;;  %v1745_v15 = vadd.f32 %v3542_v12, %v4502_v35  ;;  %v4646_v30 = vsel %vm2356_vm5, %v4619_v8, 0.0  ;;  %v4649_v62 = vmul.f32 %v1864_v34, %v4591_v19  ;;  %v1755_v56 = vmul.f32 0.5, %v1739_v18 }
 0x1eb   :  { %5296 = vst [vmem:[#allocation14_spill] sm:$0xff] %v4646_v30  ;;  %v1792_v21 = vmul.f32 %v1776_v61, %v1744_v52  ;;  %v1863_v48 = vadd.f32 1.0, %v3735_v29  ;;  %3742 = vtanh.f32 %v1835_v31  ;;  %v4651_v53 = vmul.f32 0.5, %v1744_v52 }
 0x1ec   :  { %v1790_v11 = vmul.f32 %v1774_v63, %v1742_v36  ;;  %v4653_v28 = vmul.f32 0.5, %v1742_v36  ;;  %v1777_v22 = vmul.f32 0.044715, %v1745_v15  ;;  %v3543_v16 = vadd.f32 %v1697_v24, %v4482_v4 }
 0x1ed   :  { %v1808_v10 = vmul.f32 %v1792_v21, %v1744_v52  ;;  %v4659_v49 = vsel %vm2356_vm5, %v4637_v50, 0.0  ;;  %v4662_v19 = vmul.f32 %v1865_v59, %v4598_v17  ;;  %v4664_v34 = vmul.f32 0.5, %v1745_v15 }
 0x1ee   :  { %5297 = vst [vmem:[#allocation15_spill] sm:$0xff] %v4659_v49  ;;  %v1806_v18 = vmul.f32 %v1790_v11, %v1742_v36  ;;  %v3737_v32 = vpop.eup %3736  ;;  %v1793_v57 = vmul.f32 %v1777_v22, %v1745_v15  ;;  %v1743_v40 = vadd.f32 %v3543_v16, %v4502_v35  ;;  %v4667_v12 = vmul.f32 %v1863_v48, %v1751_v44 }
 0x1ef   :  { %v1824_v25 = vadd.f32 %v1808_v10, %v1744_v52  ;;  %v3739_v37 = vpop.eup %3738  ;;  %v1868_v4 = vadd.f32 1.0, %v3737_v32  ;;  %v1896_v27 = vmul.f32 %v4523_v13, %v4610_v47  ;;  %v4673_v52 = vmul.f32 %v4523_v13, %v4621_v9 }
 0x1f0   :  { %v1822_v24 = vadd.f32 %v1806_v18, %v1742_v36  ;;  %v1866_v29 = vadd.f32 1.0, %v3739_v37  ;;  %v1809_v59 = vmul.f32 %v1793_v57, %v1745_v15  ;;  %v1775_v35 = vmul.f32 0.044715, %v1743_v40 }
 0x1f1   :  { %v3741_v61 = vpop.eup %3740  ;;  %v1840_v17 = vmul.f32 0.7978846, %v1824_v25  ;;  %v4675_v31 = vmul.f32 %v1868_v4, %v1756_v20  ;;  %v1898_v44 = vmul.f32 %v4523_v13, %v4607_v39  ;;  %v1899_v21 = vmul.f32 %v4523_v13, %v4619_v8 }
 0x1f2   :  { %v1838_v63 = vmul.f32 0.7978846, %v1822_v24  ;;  %v1825_v36 = vadd.f32 %v1809_v59, %v1745_v15  ;;  %v1913_v48 = vrot.slane %v4621_v9, 7  ;;  %v1869_v11 = vadd.f32 1.0, %v3741_v61 }
 0x1f3   :  { %3744 = vtanh.f32 %v1840_v17  ;;  %v1791_v10 = vmul.f32 %v1775_v35, %v1743_v40  ;;  %v5288_v22 = vrot.slane %v4610_v47, 7  ;;  %v4683_v16 = vmul.f32 %v1866_v29, %v1754_v58 }
 0x1f4   :  { %3746 = vtanh.f32 %v1838_v63  ;;  %v1841_v20 = vmul.f32 0.7978846, %v1825_v36  ;;  %v1914_v18 = vrot.slane %v4607_v39, 7  ;;  %v5285_v32 = vrot.slane %v4619_v8, 7 }
 0x1f5   :  { %v3743_v25 = vpop.eup %3742  ;;  %v2648_v15 = vsel %vm2356_vm5, %v4675_v31, 0.0  ;;  %v4689_v57 = vmul.f32 0.5, %v1743_v40  ;;  %v1807_v37 = vmul.f32 %v1791_v10, %v1743_v40  ;;  %v1940_v4 = vsel %vm132_vm2, %v5288_v22, %v1913_v48 }
 0x1f6   :  { %v1867_v24 = vadd.f32 1.0, %v3743_v25  ;;  %3748 = vtanh.f32 %v1841_v20  ;;  %v1938_v58 = vsel %vm132_vm2, %v1914_v18, %v5285_v32  ;;  %v1939_v61 = vsel %vm132_vm2, %v1913_v48, %v1914_v18 }
 0x1f7   :  { %v4702_v29 = vmul.f32 %v1869_v11, %v4641_v43  ;;  %v1823_v17 = vadd.f32 %v1807_v37, %v1743_v40  ;;  %v1943_v59 = vsel %vm74_vm1, %v1940_v4, 0.0  ;;  %v1944_v63 = vsel %vm74_vm1, %v1939_v61, 0.0 }
 0x1f8   :  { %v2645_v35 = vsel %vm2356_vm5, %v4683_v16, 0.0  ;;  %v4710_v36 = vmul.f32 %v1867_v24, %v1755_v56  ;;  %v1962_v10 = vmul.f32 %v4508_v38, %v1943_v59  ;;  %v1963_v20 = vmul.f32 %v4508_v38, %v1944_v63 }
 0x1f9   :  { %v1839_v48 = vmul.f32 0.7978846, %v1823_v17  ;;  %v1975_v43 = vadd.f32 %v4526_v7, %v1896_v27  ;;  %v1997_v40 = vmul.f32 %v4512_v23, %v4621_v9  ;;  %v1998_v11 = vmul.f32 %v4512_v23, %v4607_v39 }
 0x1fa   :  { %v2646_v18 = vsel %vm2356_vm5, %v4710_v36, 0.0  ;;  %v1977_v25 = vadd.f32 %v1962_v10, %v1898_v44  ;;  %v1978_v37 = vadd.f32 %v1963_v20, %v1899_v21  ;;  %v5286_v56 = vrot.slane %v4610_v47, 1 }
 0x1fb   :  { %v2647_v4 = vadd.f32 %v2646_v18, %v2645_v35  ;;  %3750 = vtanh.f32 %v1839_v48  ;;  %v2027_v24 = vrot.slane %v4621_v9, 1  ;;  %v2028_v61 = vrot.slane %v4607_v39, 1 }
 0x1fc   :  { %v2012_v17 = vadd.f32 %v1997_v40, %v1977_v25  ;;  %v2013_v51 = vadd.f32 %v1998_v11, %v1978_v37  ;;  %v2029_v1 = vrot.slane %v4619_v8, 1  ;;  %v5287_v33 = vrot.slane %v4637_v50, 1 }
 0x1fd   :  { %v3745_v27 = vpop.eup %3744  ;;  %v4726_v41 = vadd.f32 %v2648_v15, %v2647_v4  ;;  %v2054_v21 = vsel %vm632_vm4, %v2027_v24, %v2028_v61  ;;  %v2055_v35 = vsel %vm632_vm4, %v5286_v56, %v2027_v24  ;;  %v4744_v40 = vsel %vm74_vm1, %v1938_v58, 0.0 }
 0x1fe   :  { %v3747_v32 = vpop.eup %3746  ;;  %v1872_v44 = vadd.f32 1.0, %v3745_v27  ;;  %v2052_v20 = vsel %vm632_vm4, %v2029_v1, %v5287_v33  ;;  %v2053_v48 = vsel %vm632_vm4, %v2028_v61, %v2029_v1  ;;  %v2056_v15 = vsel %vm75_vm3, %v2055_v35, 0.0 }
 0x1ff   :  { %5298 = vst [vmem:[#allocation16_spill] sm:$0xff] %v4726_v41  ;;  %v1870_v10 = vadd.f32 1.0, %v3747_v32  ;;  %v2010_v11 = vadd.f32 %v4532_v6, %v1975_v43  ;;  %v2057_v32 = vsel %vm75_vm3, %v2054_v21, 0.0  ;;  %v2058_v18 = vsel %vm75_vm3, %v2053_v48, 0.0 }
 0x200   :  { %v3749_v25 = vpop.eup %3748  ;;  %v4752_v37 = vmul.f32 %v1872_v44, %v4651_v53  ;;  %v1996_v1 = vmul.f32 %v4512_v23, %v4610_v47  ;;  %v2076_v4 = vmul.f32 %v4519_v54, %v2057_v32  ;;  %v2077_v58 = vmul.f32 %v4519_v54, %v2058_v18 }
 0x201   :  { %v4759_v24 = vmul.f32 %v1870_v10, %v4653_v28  ;;  %v1873_v43 = vadd.f32 1.0, %v3749_v25  ;;  %v4763_v61 = vsel %vm75_vm3, %v2052_v20, 0.0  ;;  %v2075_v27 = vmul.f32 %v4519_v54, %v2056_v15 }
 0x202   :  { %5299 = vst [vmem:[#allocation17_spill] sm:$0xff] %v4752_v37  ;;  %v2091_v21 = vadd.f32 %v2076_v4, %v2012_v17  ;;  %v2092_v53 = vadd.f32 %v2077_v58, %v2013_v51  ;;  %v2115_v44 = vmul.f32 %v4536_v5, %v1944_v63  ;;  %v2116_v35 = vmul.f32 %v4536_v5, %v4744_v40 }
 0x203   :  { %v4770_v48 = vmul.f32 %v1873_v43, %v4664_v34  ;;  %v2089_v28 = vadd.f32 %v4542_v14, %v2010_v11  ;;  %v2114_v10 = vmul.f32 %v4536_v5, %v1943_v59  ;;  %v2153_v25 = vmul.f32 %v4544_v60, %v2056_v15 }
 0x204   :  { %v2131_v20 = vadd.f32 %v2115_v44, %v2091_v21  ;;  %v2132_v56 = vadd.f32 %v2116_v35, %v2092_v53  ;;  %v2155_v33 = vmul.f32 %v4544_v60, %v2058_v18  ;;  %v2156_v51 = vmul.f32 %v4544_v60, %v4763_v61 }
 0x205   :  { %5300 = vst [vmem:[#allocation18_spill] sm:$0xff] %v4770_v48  ;;  %v3751_v17 = vpop.eup %3750  ;;  %v5289_v4 = vrot.slane %v4770_v48, 7  ;;  %v2154_v58 = vmul.f32 %v4544_v60, %v2057_v32  ;;  %v2189_v34 = vmul.f32 %v4538_v42, %v1943_v59  ;;  %v2190_v11 = vmul.f32 %v4538_v42, %v1944_v63 }
 0x206   :  { %v4782_v43 = vadd.f32 1.0, %v3751_v17  ;;  %v2171_v22 = vadd.f32 %v2155_v33, %v2131_v20  ;;  %v2172_v15 = vadd.f32 %v2156_v51, %v2132_v56  ;;  %v2191_v21 = vmul.f32 %v4538_v42, %v4744_v40 }
 0x207   :  { %v5301_v53 = vrot.slane %v4610_v47, 7  ;;  %v2224_v35 = vmul.f32 %v4534_v3, %v4621_v9  ;;  %v4796_v59 = vmul.f32 %v4534_v3, %v4607_v39  ;;  %v2259_v33 = vmul.f32 %v4560_v26, %v2057_v32 }
 0x208   :  { %v2206_v56 = vadd.f32 %v2191_v21, %v2171_v22  ;;  %v4802_v20 = vmul.f32 %v4560_v26, %v2058_v18  ;;  %v5302_v51 = vrot.slane %v4637_v50, 7  ;;  %v5303_v17 = vrot.slane %v4619_v8, 7 }
 0x209   :  { %v1941_v44 = vsel %vm132_vm2, %v5289_v4, %v5301_v53  ;;  %v2226_v18 = vmul.f32 %v4534_v3, %v4619_v8  ;;  %v2227_v21 = vmul.f32 %v4534_v3, %v4637_v50  ;;  %v1900_v49 = vmul.f32 %v4523_v13, %v4637_v50 }
 0x20a   :  { %v1942_v63 = vsel %vm74_vm1, %v1941_v44, 0.0  ;;  %v1937_v9 = vsel %vm132_vm2, %v5303_v17, %v5302_v51  ;;  %v2031_v44 = vrot.slane %v4667_v12, 1  ;;  %v2261_v51 = vmul.f32 %v4560_v26, %v4763_v61 }
 0x20b   :  { %v1961_v53 = vmul.f32 %v4508_v38, %v1942_v63  ;;  %v2113_v39 = vmul.f32 %v4536_v5, %v1942_v63  ;;  %v1946_v32 = vsel %vm74_vm1, %v1937_v9, 0.0  ;;  %v5304_v63 = vrot.slane %v4637_v50, 1 }
 0x20c   :  { %v2192_v22 = vmul.f32 %v4538_v42, %v1946_v32  ;;  %v2241_v45 = vadd.f32 %v2226_v18, %v2206_v56  ;;  %v1901_v47 = vmul.f32 %v4523_v13, %v4667_v12  ;;  %v1917_v56 = vrot.slane %v4667_v12, 7 }
 0x20d   :  { %v1976_v17 = vadd.f32 %v1961_v53, %v4673_v52  ;;  %v2129_v4 = vadd.f32 %v2113_v39, %v2089_v28  ;;  %v2051_v9 = vsel %vm632_vm4, %v5304_v63, %v2031_v44  ;;  %v4838_v28 = vld [vmem:[%s5279_s7 + $0x1] ss:$0 sm:$0xff]  ;;  %v1902_v39 = vmul.f32 %v4523_v13, %v4649_v62 }
 0x20e   :  { %v4831_v41 = vsel %vm75_vm3, %v2051_v9, 0.0  ;;  %v2207_v30 = vadd.f32 %v2192_v22, %v2172_v15  ;;  %v2276_v9 = vadd.f32 %v2261_v51, %v2241_v45  ;;  %v1903_v15 = vmul.f32 %v4523_v13, %v4662_v19 }
 0x20f   :  { %v2011_v48 = vadd.f32 %v1996_v1, %v1976_v17  ;;  %v2169_v52 = vadd.f32 %v2153_v25, %v2129_v4  ;;  %v2262_v53 = vmul.f32 %v4560_v26, %v4831_v41  ;;  %v1918_v4 = vrot.slane %v4649_v62, 7 }
 0x210   :  { %v2242_v63 = vadd.f32 %v2227_v21, %v2207_v30  ;;  %v1964_v22 = vmul.f32 %v4508_v38, %v4744_v40  ;;  %v4851_v17 = vadd.f32 %v4838_v28, %v2276_v9  ;;  %v5305_v37 = vrot.slane %v4637_v50, 7 }
 0x211   :  { %v2090_v1 = vadd.f32 %v2075_v27, %v2011_v48  ;;  %v2204_v25 = vadd.f32 %v2189_v34, %v2169_v52  ;;  %v1965_v30 = vmul.f32 %v4508_v38, %v1946_v32  ;;  %v1935_v27 = vsel %vm132_vm2, %v1917_v56, %v1918_v4 }
 0x212   :  { %v2277_v18 = vadd.f32 %v2262_v53, %v2242_v63  ;;  %v1936_v45 = vsel %vm132_vm2, %v5305_v37, %v1917_v56  ;;  %v1948_v34 = vsel %vm74_vm1, %v1935_v27, 0.0  ;;  %v1979_v37 = vadd.f32 %v1964_v22, %v1900_v49 }
 0x213   :  { %v2130_v21 = vadd.f32 %v2114_v10, %v2090_v1  ;;  %v2239_v51 = vadd.f32 %v2224_v35, %v2204_v25  ;;  %v1947_v40 = vsel %vm74_vm1, %v1936_v45, 0.0  ;;  %v1967_v10 = vmul.f32 %v4508_v38, %v1948_v34 }
 0x214   :  { %v2298_v48 = vadd.f32 %v4838_v28, %v2277_v18  ;;  %v1966_v52 = vmul.f32 %v4508_v38, %v1947_v40  ;;  %v1980_v35 = vadd.f32 %v1965_v30, %v1901_v47  ;;  %v1999_v56 = vmul.f32 %v4512_v23, %v4619_v8 }
 0x215   :  { %v2170_v53 = vadd.f32 %v2154_v58, %v2130_v21  ;;  %v2274_v63 = vadd.f32 %v2259_v33, %v2239_v51  ;;  %v2000_v25 = vmul.f32 %v4512_v23, %v4637_v50  ;;  %v1982_v27 = vadd.f32 %v1967_v10, %v1903_v15 }
 0x216   :  { %v2312_v9 = vpack.c.bf16 %v2298_v48, %v4851_v17  ;;  %v1981_v1 = vadd.f32 %v1966_v52, %v1902_v39  ;;  %v2001_v49 = vmul.f32 %v4512_v23, %v4667_v12  ;;  %v2002_v58 = vmul.f32 %v4512_v23, %v4649_v62 }
 0x217   :  { %v2205_v18 = vadd.f32 %v2190_v11, %v2170_v53  ;;  %v2295_v45 = vadd.f32 %v4838_v28, %v2274_v63  ;;  %v2014_v47 = vadd.f32 %v1999_v56, %v1979_v37  ;;  %v2015_v33 = vadd.f32 %v2000_v25, %v1980_v35 }
 0x218   :  { %v2032_v39 = vrot.slane %v4649_v62, 1  ;;  %v2016_v8 = vadd.f32 %v2001_v49, %v1981_v1  ;;  %v2033_v17 = vrot.slane %v4662_v19, 1  ;;  %v2078_v50 = vmul.f32 %v4519_v54, %v4763_v61 }
 0x219   :  { %v2240_v22 = vadd.f32 %v4796_v59, %v2205_v18  ;;  %v2017_v11 = vadd.f32 %v2002_v58, %v1982_v27  ;;  %v2079_v30 = vmul.f32 %v4519_v54, %v4831_v41  ;;  %v2117_v21 = vmul.f32 %v4536_v5, %v1946_v32 }
 0x21a   :  { %v2050_v15 = vsel %vm632_vm4, %v2031_v44, %v2032_v39  ;;  %v2049_v59 = vsel %vm632_vm4, %v2032_v39, %v2033_v17  ;;  %v2093_v52 = vadd.f32 %v2078_v50, %v2014_v47  ;;  %v2118_v53 = vmul.f32 %v4536_v5, %v1947_v40  ;;  %v3712_v47 = vld [vmem:[%s5278_s6] sm:$0xff]  }
 0x21b   :  { %v2275_v51 = vadd.f32 %v4802_v20, %v2240_v22  ;;  %v2061_v48 = vsel %vm75_vm3, %v2050_v15, 0.0  ;;  %v2062_v61 = vsel %vm75_vm3, %v2049_v59, 0.0  ;;  %v2094_v44 = vadd.f32 %v2079_v30, %v2015_v33 }
 0x21c   :  { %v2080_v37 = vmul.f32 %v4519_v54, %v2061_v48  ;;  %v2081_v32 = vmul.f32 %v4519_v54, %v2062_v61  ;;  %v2133_v20 = vadd.f32 %v2117_v21, %v2093_v52  ;;  %v2157_v10 = vmul.f32 %v4544_v60, %v4831_v41 }
 0x21d   :  { %v2296_v63 = vadd.f32 %v4838_v28, %v2275_v51  ;;  %v2134_v1 = vadd.f32 %v2118_v53, %v2094_v44  ;;  %v2158_v56 = vmul.f32 %v4544_v60, %v2061_v48  ;;  %v2159_v25 = vmul.f32 %v4544_v60, %v2062_v61 }
 0x21e   :  { %v2095_v35 = vadd.f32 %v2080_v37, %v2016_v8  ;;  %v2096_v27 = vadd.f32 %v2081_v32, %v2017_v11  ;;  %v2173_v49 = vadd.f32 %v2157_v10, %v2133_v20  ;;  %v2193_v58 = vmul.f32 %v4538_v42, %v1947_v40 }
 0x21f   :  { %v2311_v18 = vpack.c.bf16 %v2296_v63, %v2295_v45  ;;  %v2174_v33 = vadd.f32 %v2158_v56, %v2134_v1  ;;  %v2194_v39 = vmul.f32 %v4538_v42, %v1948_v34  ;;  %v2228_v41 = vmul.f32 %v4534_v3, %v4667_v12 }
 0x220   :  { %v2229_v22 = vmul.f32 %v4534_v3, %v4649_v62  ;;  %v2208_v45 = vadd.f32 %v2193_v58, %v2173_v49  ;;  %v2263_v8 = vmul.f32 %v4560_v26, %v2061_v48  ;;  %v2264_v40 = vmul.f32 %v4560_v26, %v2062_v61 }
 0x221   :  { %3472 = vmatprep.mubr.msk.bf16.mxu1 %vm2356_vm5, %v2311_v18  ;;  %v1919_v50 = vrot.slane %v4662_v19, 7  ;;  %v2209_v11 = vadd.f32 %v2194_v39, %v2174_v33  ;;  %v2034_v15 = vrot.slane %v4683_v16, 1  ;;  %v2119_v30 = vmul.f32 %v4536_v5, %v1948_v34  ;;  %v3713_v34 = vld [vmem:[%s5278_s6 + $0x8] sm:$0xff]  }
 0x222   :  { %3473 = vmatmul.mubr.msk.bf16.vlgmr.msra.gmra.mrb[16].mxu1 %vm2356_vm5, %v2312_v9  ;;  %v2230_v21 = vmul.f32 %v4534_v3, %v4662_v19  ;;  %v2243_v51 = vadd.f32 %v2228_v41, %v2208_v45  ;;  %v1904_v48 = vmul.f32 %v4523_v13, %v4683_v16  ;;  %v1905_v9 = vmul.f32 %v4523_v13, %v4710_v36 }
 0x223   :  { %v2106_v59 = vsel %vm132_vm2, %v1918_v4, %v1919_v50  ;;  %3489 = vmatpush3.bf16.msra.mxu1 %v3712_v47  ;;  %v2244_v52 = vadd.f32 %v2229_v22, %v2209_v11  ;;  %v2135_v37 = vadd.f32 %v2119_v30, %v2095_v35  ;;  %v2145_v4 = vsel %vm632_vm4, %v2033_v17, %v2034_v15  ;;  %v3714_v47 = vld [vmem:[%s5278_s6 + $0x10] sm:$0xff]  }
 0x224   :  { %v2107_v61 = vsel %vm74_vm1, %v2106_v59, 0.0  ;;  %v5306_v44 = vmov 0.0   ;;  %v2278_v53 = vadd.f32 %v2263_v8, %v2243_v51  ;;  %v2147_v32 = vsel %vm75_vm3, %v2145_v4, 0.0 }
 0x225   :  { %3490 = vmatprep.subr.bf16.mxu1 %v5306_v44  ;;  %v2120_v63 = vmul.f32 %v4536_v5, %v2107_v61  ;;  %v2195_v20 = vmul.f32 %v4538_v42, %v2107_v61  ;;  %v2279_v10 = vadd.f32 %v2264_v40, %v2244_v52  ;;  %v2160_v1 = vmul.f32 %v4544_v60, %v2147_v32 }
 0x226   :  { %v2175_v56 = vadd.f32 %v2159_v25, %v2135_v37  ;;  %v2265_v35 = vmul.f32 %v4560_v26, %v2147_v32  ;;  %v2299_v18 = vadd.f32 %v4838_v28, %v2278_v53  ;;  %v1906_v17 = vmul.f32 %v4523_v13, %v4675_v31 }
 0x227   :  { %v2136_v49 = vadd.f32 %v2120_v63, %v2096_v27  ;;  %v1907_v58 = vmul.f32 %v4523_v13, %v4702_v29  ;;  %3491 = vmatpush3.bf16.msra.mxu1 %v3713_v34  ;;  %v2300_v33 = vadd.f32 %v4838_v28, %v2279_v10  ;;  %v1920_v25 = vrot.slane %v4683_v16, 7 }
 0x228   :  { %v2210_v39 = vadd.f32 %v2195_v20, %v2175_v56  ;;  %v1921_v41 = vrot.slane %v4710_v36, 7  ;;  %3492 = vmatprep.subr.bf16.mxu1 %v5306_v44  ;;  %v1922_v22 = vrot.slane %v4675_v31, 7  ;;  %v1983_v45 = vadd.f32 %v4526_v7, %v1904_v48 }
 0x229   :  { %v2176_v27 = vadd.f32 %v2160_v1, %v2136_v49  ;;  %v2003_v8 = vmul.f32 %v4512_v23, %v4683_v16  ;;  %v2313_v40 = vpack.c.bf16 %v2300_v33, %v2299_v18  ;;  %v1934_v51 = vsel %vm132_vm2, %v1919_v50, %v1920_v25 }
 0x22a   :  { %v2245_v11 = vadd.f32 %v2230_v21, %v2210_v39  ;;  %v1933_v30 = vsel %vm132_vm2, %v1920_v25, %v1921_v41  ;;  %v1932_v34 = vsel %vm132_vm2, %v1921_v41, %v1922_v22  ;;  %v1949_v7 = vsel %vm74_vm1, %v1934_v51, 0.0  ;;  %v3715_v21 = vld [vmem:[%s5278_s6 + $0x18] sm:$0xff]  }
 0x22b   :  { %v2211_v59 = vadd.f32 %v4548_v55, %v2176_v27  ;;  %v1950_v48 = vsel %vm74_vm1, %v1933_v30, 0.0  ;;  %3493 = vmatpush3.bf16.msra.mxu1 %v3714_v47  ;;  %3476 = vmatprep.mubr.msk.bf16.mxu1 %vm2356_vm5, %v2313_v40  ;;  %v4981_v52 = vsel %vm74_vm1, %v1932_v34, 0.0  ;;  %v1968_v61 = vmul.f32 %v4508_v38, %v1949_v7 }
 0x22c   :  { %v2280_v50 = vadd.f32 %v2265_v35, %v2245_v11  ;;  %v1969_v37 = vmul.f32 %v4508_v38, %v1950_v48  ;;  %3494 = vmatprep.subr.bf16.mxu1 %v5306_v44  ;;  %v1970_v53 = vmul.f32 %v4508_v38, %v4981_v52  ;;  %v2004_v63 = vmul.f32 %v4512_v23, %v4710_v36 }
 0x22d   :  { %v2246_v4 = vadd.f32 %v4553_v0, %v2211_v59  ;;  %v2005_v32 = vmul.f32 %v4512_v23, %v4675_v31  ;;  %v1984_v10 = vadd.f32 %v1968_v61, %v1905_v9  ;;  %v2018_v56 = vadd.f32 %v4532_v6, %v1983_v45 }
 0x22e   :  { %v2301_v20 = vadd.f32 %v4838_v28, %v2280_v50  ;;  %v1985_v1 = vadd.f32 %v1969_v37, %v1906_v17  ;;  %v1986_v18 = vadd.f32 %v1970_v53, %v1907_v58  ;;  %v2035_v49 = vrot.slane %v4710_v36, 1 }
 0x22f   :  { %v2281_v35 = vadd.f32 %v4563_v46, %v2246_v4  ;;  %v2036_v47 = vrot.slane %v4675_v31, 1  ;;  %3495 = vmatpush3.bf16.msra.mxu1 %v3715_v21  ;;  %v2019_v33 = vadd.f32 %v2003_v8, %v1984_v10  ;;  %v2037_v25 = vrot.slane %v4702_v29, 1 }
 0x230   :  { %v2020_v39 = vadd.f32 %v2004_v63, %v1985_v1  ;;  %v2097_v41 = vadd.f32 %v4542_v14, %v2018_v56  ;;  %v2021_v9 = vadd.f32 %v2005_v32, %v1986_v18  ;;  %v2048_v17 = vsel %vm632_vm4, %v2034_v15, %v2035_v49 }
 0x231   :  { %v2302_v27 = vadd.f32 %v4838_v28, %v2281_v35  ;;  %v2047_v6 = vsel %vm632_vm4, %v2035_v49, %v2036_v47  ;;  %v2046_v58 = vsel %vm632_vm4, %v2036_v47, %v2037_v25  ;;  %v2063_v45 = vsel %vm75_vm3, %v2048_v17, 0.0 }
 0x232   :  { %v2064_v14 = vsel %vm75_vm3, %v2047_v6, 0.0  ;;  %v2121_v8 = vmul.f32 %v4536_v5, %v1949_v7  ;;  %v2065_v11 = vsel %vm75_vm3, %v2046_v58, 0.0  ;;  %v2082_v16 = vmul.f32 %v4519_v54, %v2063_v45 }
 0x233   :  { %v2314_v40 = vpack.c.bf16 %v2302_v27, %v2301_v20  ;;  %v2083_v30 = vmul.f32 %v4519_v54, %v2064_v14  ;;  %v5020_v15 = vmul.f32 %v4782_v43, %v4689_v57  ;;  %v2084_v51 = vmul.f32 %v4519_v54, %v2065_v11 }
 0x234   :  { %v2137_v59 = vadd.f32 %v2121_v8, %v2097_v41  ;;  %v2161_v34 = vmul.f32 %v4544_v60, %v2063_v45  ;;  %v2098_v7 = vadd.f32 %v2082_v16, %v2019_v33  ;;  %v2122_v50 = vmul.f32 %v4536_v5, %v1950_v48 }
 0x235   :  { %3477 = vmatmul.mubr.msk.bf16.gmra.mrb[20].mxu1 %vm2356_vm5, %v2314_v40  ;;  %v2099_v21 = vadd.f32 %v2083_v30, %v2020_v39  ;;  %v2162_v61 = vmul.f32 %v4544_v60, %v2064_v14  ;;  %v2100_v37 = vadd.f32 %v2084_v51, %v2021_v9  ;;  %v2163_v4 = vmul.f32 %v4544_v60, %v2065_v11 }
 0x236   :  { %v2177_v53 = vadd.f32 %v2161_v34, %v2137_v59  ;;  %v2197_v57 = vmul.f32 %v4538_v42, %v1950_v48  ;;  %v2138_v43 = vadd.f32 %v2122_v50, %v2098_v7  ;;  %v2198_v63 = vmul.f32 %v4538_v42, %v4981_v52 }
 0x237   :  { %v2232_v32 = vmul.f32 %v4534_v3, %v4710_v36  ;;  %v2233_v20 = vmul.f32 %v4534_v3, %v4675_v31  ;;  %v2267_v1 = vmul.f32 %v4560_v26, %v2064_v14  ;;  %v2268_v56 = vmul.f32 %v4560_v26, %v2065_v11 }
 0x238   :  { %v2212_v10 = vadd.f32 %v2197_v57, %v2177_v53  ;;  %v1908_v35 = vmul.f32 %v4523_v13, %v4759_v24  ;;  %v2178_v18 = vadd.f32 %v2162_v61, %v2138_v43  ;;  %v1909_v48 = vmul.f32 %v4523_v13, %v5020_v15 }
 0x239   :  { %v1923_v49 = vrot.slane %v4702_v29, 7  ;;  %v1924_v47 = vrot.slane %v4759_v24, 7  ;;  %v2006_v33 = vmul.f32 %v4512_v23, %v4702_v29  ;;  %v2038_v39 = vrot.slane %v4759_v24, 1 }
 0x23a   :  { %v2247_v36 = vadd.f32 %v2232_v32, %v2212_v10  ;;  %v2039_v41 = vrot.slane %v5020_v15, 1  ;;  %v2213_v27 = vadd.f32 %v2198_v63, %v2178_v18  ;;  %v2007_v17 = vmul.f32 %v4512_v23, %v4759_v24 }
 0x23b   :  { %v1930_v9 = vsel %vm132_vm2, %v1923_v49, %v1924_v47  ;;  %v1931_v6 = vsel %vm132_vm2, %v1922_v22, %v1923_v49  ;;  %v2045_v22 = vsel %vm632_vm4, %v2037_v25, %v2038_v39  ;;  %v2123_v51 = vmul.f32 %v4536_v5, %v4981_v52 }
 0x23c   :  { %v2282_v58 = vadd.f32 %v2267_v1, %v2247_v36  ;;  %v1952_v45 = vsel %vm74_vm1, %v1931_v6, 0.0  ;;  %v1953_v14 = vsel %vm74_vm1, %v1930_v9, 0.0  ;;  %v2044_v8 = vsel %vm632_vm4, %v2038_v39, %v2039_v41 }
 0x23d   :  { %v2248_v40 = vadd.f32 %v2233_v20, %v2213_v27  ;;  %v1971_v11 = vmul.f32 %v4508_v38, %v1952_v45  ;;  %v1972_v31 = vmul.f32 %v4508_v38, %v1953_v14  ;;  %v2066_v16 = vsel %vm75_vm3, %v2045_v22, 0.0 }
 0x23e   :  { %v2067_v30 = vsel %vm75_vm3, %v2044_v8, 0.0  ;;  %v2124_v59 = vmul.f32 %v4536_v5, %v1952_v45  ;;  %v2085_v61 = vmul.f32 %v4519_v54, %v2066_v16  ;;  %v2303_v53 = vadd.f32 %v4838_v28, %v2282_v58 }
 0x23f   :  { %v2283_v34 = vadd.f32 %v2268_v56, %v2248_v40  ;;  %v1987_v7 = vadd.f32 %v1971_v11, %v1908_v35  ;;  %v1988_v50 = vadd.f32 %v1972_v31, %v1909_v48  ;;  %v2139_v57 = vadd.f32 %v2123_v51, %v2099_v21  ;;  %v5308_v40 = vld [vmem:[#allocation18_spill] sm:$0xff] }
 0x240   :  { %v2140_v25 = vadd.f32 %v2124_v59, %v2100_v37  ;;  %v2164_v43 = vmul.f32 %v4544_v60, %v2066_v16  ;;  %v2086_v10 = vmul.f32 %v4519_v54, %v2067_v30  ;;  %v2199_v56 = vmul.f32 %v4538_v42, %v1952_v45  ;;  %v5307_v45 = vld [vmem:[#allocation17_spill] sm:$0xff] }
 0x241   :  { %v2304_v63 = vadd.f32 %v4838_v28, %v2283_v34  ;;  %v2022_v32 = vadd.f32 %v2006_v33, %v1987_v7  ;;  %v2023_v20 = vadd.f32 %v2007_v17, %v1988_v50  ;;  %v2179_v52 = vadd.f32 %v2163_v4, %v2139_v57 }
 0x242   :  { %v2180_v1 = vadd.f32 %v2164_v43, %v2140_v25  ;;  %v2200_v35 = vmul.f32 %v4538_v42, %v1953_v14  ;;  %v5081_v18 = vsel %vm2356_vm5, %v4702_v29, 0.0  ;;  %v2234_v33 = vmul.f32 %v4534_v3, %v4702_v29 }
 0x243   :  { %v2315_v21 = vpack.c.bf16 %v2304_v63, %v2303_v53  ;;  %v2101_v37 = vadd.f32 %v2085_v61, %v2022_v32  ;;  %v2102_v48 = vadd.f32 %v2086_v10, %v2023_v20  ;;  %v2214_v49 = vadd.f32 %v2199_v56, %v2179_v52 }
 0x244   :  { %v2215_v36 = vadd.f32 %v2200_v35, %v2180_v1  ;;  %v2235_v4 = vmul.f32 %v4534_v3, %v4759_v24  ;;  %v5089_v39 = vsel %vm2356_vm5, %v4759_v24, 0.0  ;;  %v2269_v27 = vmul.f32 %v4560_v26, %v2066_v16 }
 0x245   :  { %3480 = vmatprep.mubr.msk.bf16.mxu1 %vm2356_vm5, %v2315_v21  ;;  %v2270_v9 = vmul.f32 %v4560_v26, %v2067_v30  ;;  %v1925_v6 = vrot.slane %v5020_v15, 7  ;;  %v2249_v17 = vadd.f32 %v2234_v33, %v2214_v49  ;;  %v1910_v29 = vmul.f32 %v4523_v13, %v5307_v45 }
 0x246   :  { %v2250_v58 = vadd.f32 %v2235_v4, %v2215_v36  ;;  %v1926_v8 = vrot.slane %v5307_v45, 7  ;;  %v1911_v11 = vmul.f32 %v4523_v13, %v5308_v40  ;;  %v2040_v31 = vrot.slane %v5307_v45, 1 }
 0x247   :  { %v1929_v24 = vsel %vm132_vm2, %v1924_v47, %v1925_v6  ;;  %v2041_v22 = vrot.slane %v5308_v40, 1  ;;  %v2284_v26 = vadd.f32 %v2269_v27, %v2249_v17  ;;  %v2008_v43 = vmul.f32 %v4512_v23, %v5020_v15 }
 0x248   :  { %v2285_v16 = vadd.f32 %v2270_v9, %v2250_v58  ;;  %v1928_v51 = vsel %vm132_vm2, %v1925_v6, %v1926_v8  ;;  %v1954_v59 = vsel %vm74_vm1, %v1929_v24, 0.0  ;;  %v2043_v7 = vsel %vm632_vm4, %v2039_v41, %v2040_v31 }
 0x249   :  { %v1955_v34 = vsel %vm74_vm1, %v1928_v51, 0.0  ;;  %v1973_v13 = vmul.f32 %v4508_v38, %v1954_v59  ;;  %v2042_v47 = vsel %vm632_vm4, %v2040_v31, %v2041_v22  ;;  %v2305_v50 = vadd.f32 %v4838_v28, %v2284_v26 }
 0x24a   :  { %v2306_v61 = vadd.f32 %v4838_v28, %v2285_v16  ;;  %v1974_v53 = vmul.f32 %v4508_v38, %v1955_v34  ;;  %v2068_v57 = vsel %vm75_vm3, %v2043_v7, 0.0  ;;  %v2069_v63 = vsel %vm75_vm3, %v2042_v47, 0.0 }
 0x24b   :  { %v1989_v25 = vadd.f32 %v1973_v13, %v1910_v29  ;;  %v2125_v32 = vmul.f32 %v4536_v5, %v1953_v14  ;;  %v2009_v10 = vmul.f32 %v4512_v23, %v5307_v45  ;;  %v2126_v52 = vmul.f32 %v4536_v5, %v1954_v59  ;;  %v5310_v29 = vld [vmem:[#allocation12_spill] sm:$0xff]  ;;  %v3784_v13 = vld [vmem:[#allocation7 + $0x8] ss:$0 sm:$0xff] }
 0x24c   :  { %v2316_v20 = vpack.c.bf16 %v2306_v61, %v2305_v50  ;;  %v1990_v41 = vadd.f32 %v1974_v53, %v1911_v11  ;;  %v2165_v38 = vmul.f32 %v4544_v60, %v2067_v30  ;;  %v2087_v56 = vmul.f32 %v4519_v54, %v2068_v57 }
 0x24d   :  { %v2024_v1 = vadd.f32 %v2008_v43, %v1989_v25  ;;  %v2141_v35 = vadd.f32 %v2125_v32, %v2101_v37  ;;  %v2088_v49 = vmul.f32 %v4519_v54, %v2069_v63  ;;  %v2142_v36 = vadd.f32 %v2126_v52, %v2102_v48  ;;  %v5312_v32 = vld [vmem:[#allocation13_spill] sm:$0xff] }
 0x24e   :  { %3481 = vmatmul.mubr.msk.bf16.gmra.mrb[24].mxu1 %vm2356_vm5, %v2316_v20  ;;  %v2025_v21 = vadd.f32 %v2009_v10, %v1990_v41  ;;  %v2166_v14 = vmul.f32 %v4544_v60, %v2068_v57  ;;  %v2167_v4 = vmul.f32 %v4544_v60, %v2069_v63  ;;  %v2201_v27 = vmul.f32 %v4538_v42, %v1954_v59  ;;  %v5313_v20 = vld [vmem:[#allocation14_spill] sm:$0xff] }
 0x24f   :  { %v2103_v33 = vadd.f32 %v2087_v56, %v2024_v1  ;;  %v2181_v23 = vadd.f32 %v2165_v38, %v2141_v35  ;;  %v2202_v6 = vmul.f32 %v4538_v42, %v1955_v34  ;;  %v2236_v37 = vmul.f32 %v4534_v3, %v5020_v15 }
 0x250   :  { %v2104_v9 = vadd.f32 %v2088_v49, %v2025_v21  ;;  %v2182_v30 = vadd.f32 %v2166_v14, %v2142_v36  ;;  %v5309_v58 = vrot.slane %v5308_v40, 7  ;;  %v2127_v48 = vmul.f32 %v4536_v5, %v1955_v34 }
 0x251   :  { %v2216_v17 = vadd.f32 %v2201_v27, %v2181_v23  ;;  %v5311_v11 = vrot.slane %v5310_v29, 1  ;;  %v2237_v26 = vmul.f32 %v4534_v3, %v5307_v45  ;;  %v2272_v50 = vmul.f32 %v3784_v13, %v2069_v63  ;;  %v5315_v63 = vld [vmem:[#allocation15_spill] sm:$0xff] }
 0x252   :  { %v2105_v54 = vsel %vm132_vm2, %v1926_v8, %v5309_v58  ;;  %v2217_v31 = vadd.f32 %v2202_v6, %v2182_v30  ;;  %v2271_v8 = vmul.f32 %v3784_v13, %v2068_v57  ;;  %v2143_v47 = vadd.f32 %v2127_v48, %v2103_v33  ;;  %v5314_v57 = vld [vmem:[#allocation16_spill] sm:$0xff] }
 0x253   :  { %v2146_v24 = vsel %vm632_vm4, %v2041_v22, %v5311_v11  ;;  %v2108_v16 = vsel %vm74_vm1, %v2105_v54, 0.0  ;;  %v2251_v59 = vadd.f32 %v2236_v37, %v2216_v17  ;;  %v2628_v41 = vadd.f32 %v5313_v20, %v5312_v32 }
 0x254   :  { %v2148_v51 = vsel %vm75_vm3, %v2146_v24, 0.0  ;;  %v2128_v34 = vmul.f32 %v4536_v5, %v2108_v16  ;;  %v2252_v7 = vadd.f32 %v2237_v26, %v2217_v31  ;;  %v2203_v61 = vmul.f32 %v4538_v42, %v2108_v16 }
 0x255   :  { %v2168_v22 = vmul.f32 %v4544_v60, %v2148_v51  ;;  %v2286_v53 = vadd.f32 %v2271_v8, %v2251_v59  ;;  %v2183_v43 = vadd.f32 %v2167_v4, %v2143_v47  ;;  %v2631_v52 = vsel %vm2356_vm5, %v4667_v12, 0.0  ;;  %v3716_v8 = vld [vmem:[%s5277_s5] sm:$0xff]   ;;  %v3719_v47 = vld [vmem:[%s5277_s5 + $0x18] sm:$0xff]  }
 0x256   :  { %v2144_v25 = vadd.f32 %v2128_v34, %v2104_v9  ;;  %v2287_v10 = vadd.f32 %v2272_v50, %v2252_v7  ;;  %v2651_v5 = vadd.f32 %v5081_v18, %v5314_v57  ;;  %v2238_v60 = vmul.f32 %v4534_v3, %v5308_v40  ;;  %3500 = vmatprep.subr.bf16.mxu1 %v3716_v8  ;;  %v3718_v34 = vld [vmem:[%s5277_s5 + $0x10] sm:$0xff]   ;;  %v5202_v7 = vld [vmem:[%s5279_s7 + $0x2] ss:$0 sm:$0xff] }
 0x257   :  { %v2218_v1 = vadd.f32 %v2203_v61, %v2183_v43  ;;  %v2630_v42 = vadd.f32 %v5315_v63, %v2628_v41  ;;  %v2307_v56 = vadd.f32 %v4838_v28, %v2286_v53  ;;  %v2654_v49 = vsel %vm2356_vm5, %v5020_v15, 0.0 }
 0x258   :  { %v2184_v38 = vadd.f32 %v2168_v22, %v2144_v25  ;;  %v2308_v35 = vadd.f32 %v4838_v28, %v2287_v10  ;;  %v2653_v21 = vadd.f32 %v5089_v39, %v2651_v5  ;;  %v2273_v18 = vmul.f32 %v3784_v13, %v2148_v51 }
 0x259   :  { %v2253_v36 = vadd.f32 %v2238_v60, %v2218_v1  ;;  %v2632_v14 = vadd.f32 %v2631_v52, %v2630_v42  ;;  %v2633_v3 = vsel %vm2356_vm5, %v4649_v62, 0.0  ;;  %v2656_v39 = vsel %vm2356_vm5, %v5307_v45, 0.0 }
 0x25a   :  { %v2219_v12 = vadd.f32 %v4548_v55, %v2184_v38  ;;  %v2317_v33 = vpack.c.bf16 %v2308_v35, %v2307_v56  ;;  %v2655_v4 = vadd.f32 %v2654_v49, %v2653_v21  ;;  %v2635_v15 = vsel %vm2356_vm5, %v4662_v19, 0.0 }
 0x25b   :  { %v2288_v27 = vadd.f32 %v2273_v18, %v2253_v36  ;;  %v2634_v9 = vadd.f32 %v2633_v3, %v2632_v14  ;;  %v2658_v30 = vsel %vm2356_vm5, %v5308_v40, 0.0 }
 0x25c   :  { %v2254_v23 = vadd.f32 %v4553_v0, %v2219_v12  ;;  %3484 = vmatprep.mubr.msk.bf16.mxu1 %vm2356_vm5, %v2317_v33  ;;  %v2657_v55 = vadd.f32 %v2656_v39, %v2655_v4 }
 0x25d   :  { %v2309_v62 = vadd.f32 %v4838_v28, %v2288_v27  ;;  %v2636_v37 = vadd.f32 %v2635_v15, %v2634_v9 }
 0x25e   :  { %v2289_v6 = vadd.f32 %v4563_v46, %v2254_v23  ;;  %v2659_v0 = vadd.f32 %v2658_v30, %v2657_v55 }
 0x25f   :  { %v2637_v58 = vrot.slane %v2636_v37, 4 }
 0x260   :  { %v2310_v17 = vadd.f32 %v4838_v28, %v2289_v6  ;;  %v2660_v54 = vrot.slane %v2659_v0, 4 }
 0x261   :  { %v2638_v48 = vadd.f32 %v2637_v58, %v2636_v37 }
 0x262   :  { %v2318_v45 = vpack.c.bf16 %v2310_v17, %v2309_v62  ;;  %v2661_v29 = vadd.f32 %v2660_v54, %v2659_v0 }
 0x263   :  { %v2639_v19 = vrot.slane %v2638_v48, 2 }
 0x264   :  { %3485 = vmatmul.mubr.msk.bf16.gmra.mrb[28].mxu1 %vm2356_vm5, %v2318_v45  ;;  %v2662_v40 = vrot.slane %v2661_v29, 2 }
 0x265   :  { %3496 = vmatprep.mubr.msk.bf16.mxu1 %vm3903_vm6, %v5306_v44  ;;  %v2640_v11 = vadd.f32 %v2639_v19, %v2638_v48  ;;  %v3717_v44 = vld [vmem:[%s5277_s5 + $0x8] sm:$0xff]  }
 0x266   :  { %v2663_v46 = vadd.f32 %v2662_v40, %v2661_v29 }
 0x267   :  { %v2641_v24 = vrot.slane %v2640_v11, 1 }
 0x268   :  { %v2664_v31 = vrot.slane %v2663_v46, 1 }
 0x269   :  { %v2642_v26 = vadd.f32 %v2641_v24, %v2640_v11 }
 0x26a   :  { %v2665_v16 = vadd.f32 %v2664_v31, %v2663_v46 }
 0x26b   :  { %v2644_v28 = vmul.f32 0.015625, %v2642_v26 }
 0x26c   :  { %v2666_v51 = vmul.f32 0.015625, %v2665_v16 }
 0x26e   :  { %v2668_v59 = vsel %vm2667_vm7, %v2644_v28, %v2666_v51 }
 0x26f   :  { %v2669_v13 = vpack.c.bf16 %v2668_v59, %v2668_v59 }
 0x271   :  { %3497 = vmatmul.mubr.msk.bf16.vlgmr.msra.gmra.mrb[32].mxu1 %vm2356_vm5, %v2669_v13 }
 0x272   :  { %3501 = vmatpush3.bf16.msra.mxu1 %v3716_v8 }
 0x273   :  { %3502 = vmatprep.subr.bf16.mxu1 %v3717_v44 }
 0x276   :  { %3503 = vmatpush3.bf16.msra.mxu1 %v3717_v44 }
 0x277   :  { %3504 = vmatprep.subr.bf16.mxu1 %v3718_v34 }
 0x27a   :  { %3505 = vmatpush3.bf16.msra.mxu1 %v3718_v34 }
 0x27b   :  { %3506 = vmatprep.subr.bf16.mxu1 %v3719_v47 }
 0x27e   :  { %3507 = vmatpush3.bf16.msra.mxu1 %v3719_v47 }
 0x2f5   :  { %v3474_v50 = vpop.f32.mrb[16].mxu1 }
 0x2f6   :  { %v2424_v22 = vadd.f32 %v3474_v50, %v5202_v7  ;;  %v2415_v61 = vpop.f32.mrb[17].mxu1 }
 0x2f7   :  { %v2416_v53 = vadd.f32 %v5202_v7, %v2415_v61  ;;  %v3475_v25 = vpop.f32.mrb[18].mxu1 }
 0x2f8   :  { %v2496_v43 = vmul.f32 0.044715, %v2424_v22  ;;  %v2427_v32 = vadd.f32 %v3475_v25, %v5202_v7  ;;  %v2418_v20 = vpop.f32.mrb[19].mxu1  ;;  %v2480_v17 = vmul.f32 0.5, %v2424_v22 }
 0x2f9   :  { %v2494_v41 = vmul.f32 0.044715, %v2416_v53  ;;  %v2419_v10 = vadd.f32 %v5202_v7, %v2418_v20  ;;  %v2478_v40 = vmul.f32 0.5, %v2416_v53 }
 0x2fa   :  { %v2512_v52 = vmul.f32 %v2496_v43, %v2424_v22  ;;  %v2497_v57 = vmul.f32 0.044715, %v2427_v32  ;;  %v2481_v24 = vmul.f32 0.5, %v2427_v32 }
 0x2fb   :  { %v2510_v5 = vmul.f32 %v2494_v41, %v2416_v53  ;;  %v2495_v38 = vmul.f32 0.044715, %v2419_v10  ;;  %v2479_v59 = vmul.f32 0.5, %v2419_v10 }
 0x2fc   :  { %v2528_v1 = vmul.f32 %v2512_v52, %v2424_v22  ;;  %v2513_v60 = vmul.f32 %v2497_v57, %v2427_v32 }
 0x2fd   :  { %v2526_v63 = vmul.f32 %v2510_v5, %v2416_v53  ;;  %v2511_v42 = vmul.f32 %v2495_v38, %v2419_v10 }
 0x2fe   :  { %v2544_v56 = vadd.f32 %v2528_v1, %v2424_v22  ;;  %v2529_v35 = vmul.f32 %v2513_v60, %v2427_v32 }
 0x2ff   :  { %v2542_v21 = vadd.f32 %v2526_v63, %v2416_v53  ;;  %v2527_v49 = vmul.f32 %v2511_v42, %v2419_v10 }
 0x300   :  { %v2560_v12 = vmul.f32 0.7978846, %v2544_v56  ;;  %v2545_v36 = vadd.f32 %v2529_v35, %v2427_v32 }
 0x301   :  { %v2558_v18 = vmul.f32 0.7978846, %v2542_v21  ;;  %v2543_v14 = vadd.f32 %v2527_v49, %v2419_v10 }
 0x302   :  { %3752 = vtanh.f32 %v2560_v12  ;;  %v2561_v33 = vmul.f32 0.7978846, %v2545_v36 }
 0x303   :  { %3754 = vtanh.f32 %v2558_v18  ;;  %v2559_v3 = vmul.f32 0.7978846, %v2543_v14 }
 0x304   :  { %3756 = vtanh.f32 %v2561_v33 }
 0x305   :  { %3758 = vtanh.f32 %v2559_v3 }
 0x308   :  { %v3478_v4 = vpop.f32.mrb[20].mxu1 }
 0x309   :  { %v2440_v23 = vadd.f32 %v3478_v4, %v5202_v7  ;;  %v2431_v27 = vpop.f32.mrb[21].mxu1 }
 0x30a   :  { %v2432_v9 = vadd.f32 %v5202_v7, %v2431_v27  ;;  %v3479_v39 = vpop.f32.mrb[22].mxu1 }
 0x30b   :  { %v2500_v15 = vmul.f32 0.044715, %v2440_v23  ;;  %v2443_v55 = vadd.f32 %v3479_v39, %v5202_v7  ;;  %v2434_v30 = vpop.f32.mrb[23].mxu1  ;;  %v2484_v49 = vmul.f32 0.5, %v2440_v23 }
 0x30c   :  { %v3753_v6 = vpop.eup %3752  ;;  %v2498_v62 = vmul.f32 0.044715, %v2432_v9  ;;  %v2435_v37 = vadd.f32 %v5202_v7, %v2434_v30  ;;  %v2482_v33 = vmul.f32 0.5, %v2432_v9 }
 0x30d   :  { %v3755_v0 = vpop.eup %3754  ;;  %v2516_v58 = vmul.f32 %v2500_v15, %v2440_v23  ;;  %v2501_v54 = vmul.f32 0.044715, %v2443_v55  ;;  %v2592_v45 = vadd.f32 1.0, %v3753_v6  ;;  %v2485_v12 = vmul.f32 0.5, %v2443_v55 }
 0x30e   :  { %v3757_v48 = vpop.eup %3756  ;;  %v2514_v29 = vmul.f32 %v2498_v62, %v2432_v9  ;;  %v2499_v19 = vmul.f32 0.044715, %v2435_v37  ;;  %v2590_v11 = vadd.f32 1.0, %v3755_v0  ;;  %v2483_v3 = vmul.f32 0.5, %v2435_v37 }
 0x30f   :  { %v3759_v46 = vpop.eup %3758  ;;  %v2532_v31 = vmul.f32 %v2516_v58, %v2440_v23  ;;  %v2517_v26 = vmul.f32 %v2501_v54, %v2443_v55  ;;  %v2593_v16 = vadd.f32 1.0, %v3757_v48  ;;  %v2608_v34 = vmul.f32 %v2592_v45, %v2480_v17 }
 0x310   :  { %v2530_v28 = vmul.f32 %v2514_v29, %v2432_v9  ;;  %v2515_v51 = vmul.f32 %v2499_v19, %v2435_v37  ;;  %v2591_v13 = vadd.f32 1.0, %v3759_v46  ;;  %v2606_v61 = vmul.f32 %v2590_v11, %v2478_v40 }
 0x311   :  { %v2548_v8 = vadd.f32 %v2532_v31, %v2440_v23  ;;  %v2533_v44 = vmul.f32 %v2517_v26, %v2443_v55  ;;  %v2609_v47 = vmul.f32 %v2593_v16, %v2481_v24 }
 0x312   :  { %v2546_v50 = vadd.f32 %v2530_v28, %v2432_v9  ;;  %v2531_v22 = vmul.f32 %v2515_v51, %v2435_v37  ;;  %v2607_v25 = vmul.f32 %v2591_v13, %v2479_v59 }
 0x313   :  { %v2564_v43 = vmul.f32 0.7978846, %v2548_v8  ;;  %v2549_v53 = vadd.f32 %v2533_v44, %v2443_v55  ;;  %v2754_v20 = vpack.c.bf16 %v2609_v47, %v2608_v34 }
 0x314   :  { %v2562_v41 = vmul.f32 0.7978846, %v2546_v50  ;;  %v2547_v32 = vadd.f32 %v2531_v22, %v2435_v37  ;;  %v2753_v52 = vpack.c.bf16 %v2607_v25, %v2606_v61 }
 0x315   :  { %3760 = vtanh.f32 %v2564_v43  ;;  %v2565_v57 = vmul.f32 0.7978846, %v2549_v53 }
 0x316   :  { %3762 = vtanh.f32 %v2562_v41  ;;  %v2563_v5 = vmul.f32 0.7978846, %v2547_v32  ;;  %3508 = vmatprep.mubr.msk.bf16.mxu1 %vm2356_vm5, %v2753_v52 }
 0x317   :  { %3764 = vtanh.f32 %v2565_v57  ;;  %3509 = vmatmul.mubr.msk.bf16.vlgmr.msra.gmra.mrb[36].mxu1 %vm2356_vm5, %v2754_v20 }
 0x318   :  { %3766 = vtanh.f32 %v2563_v5 }
 0x31f   :  { %v3761_v10 = vpop.eup %3760 }
 0x320   :  { %v3763_v38 = vpop.eup %3762  ;;  %v2596_v1 = vadd.f32 1.0, %v3761_v10 }
 0x321   :  { %v3765_v60 = vpop.eup %3764  ;;  %v3482_v63 = vpop.f32.mrb[24].mxu1  ;;  %v2594_v42 = vadd.f32 1.0, %v3763_v38 }
 0x322   :  { %v3767_v56 = vpop.eup %3766  ;;  %v2456_v35 = vadd.f32 %v3482_v63, %v5202_v7  ;;  %v2447_v21 = vpop.f32.mrb[25].mxu1  ;;  %v2597_v36 = vadd.f32 1.0, %v3765_v60  ;;  %v2612_v30 = vmul.f32 %v2596_v1, %v2484_v49 }
 0x323   :  { %v2448_v18 = vadd.f32 %v5202_v7, %v2447_v21  ;;  %v3483_v14 = vpop.f32.mrb[26].mxu1  ;;  %v2595_v4 = vadd.f32 1.0, %v3767_v56  ;;  %v2610_v17 = vmul.f32 %v2594_v42, %v2482_v33 }
 0x324   :  { %v2504_v27 = vmul.f32 0.044715, %v2456_v35  ;;  %v2459_v39 = vadd.f32 %v3483_v14, %v5202_v7  ;;  %v2450_v15 = vpop.f32.mrb[27].mxu1  ;;  %v2613_v6 = vmul.f32 %v2597_v36, %v2485_v12  ;;  %v2488_v20 = vmul.f32 0.5, %v2456_v35 }
 0x325   :  { %v2502_v62 = vmul.f32 0.044715, %v2448_v18  ;;  %v2451_v0 = vadd.f32 %v5202_v7, %v2450_v15  ;;  %v2611_v58 = vmul.f32 %v2595_v4, %v2483_v3  ;;  %v2486_v5 = vmul.f32 0.5, %v2448_v18 }
 0x326   :  { %v2520_v23 = vmul.f32 %v2504_v27, %v2456_v35  ;;  %v2505_v55 = vmul.f32 0.044715, %v2459_v39  ;;  %v2756_v54 = vpack.c.bf16 %v2613_v6, %v2612_v30  ;;  %v2489_v63 = vmul.f32 0.5, %v2459_v39 }
 0x327   :  { %v2518_v45 = vmul.f32 %v2502_v62, %v2448_v18  ;;  %v2503_v48 = vmul.f32 0.044715, %v2451_v0  ;;  %v2755_v29 = vpack.c.bf16 %v2611_v58, %v2610_v17  ;;  %v2487_v49 = vmul.f32 0.5, %v2451_v0 }
 0x328   :  { %v2536_v9 = vmul.f32 %v2520_v23, %v2456_v35  ;;  %v2521_v37 = vmul.f32 %v2505_v55, %v2459_v39 }
 0x329   :  { %v2534_v19 = vmul.f32 %v2518_v45, %v2448_v18  ;;  %v2519_v40 = vmul.f32 %v2503_v48, %v2451_v0  ;;  %3512 = vmatprep.mubr.msk.bf16.mxu1 %vm2356_vm5, %v2755_v29 }
 0x32a   :  { %v2552_v11 = vadd.f32 %v2536_v9, %v2456_v35  ;;  %v2537_v46 = vmul.f32 %v2521_v37, %v2459_v39  ;;  %3513 = vmatmul.mubr.msk.bf16.gmra.mrb[40].mxu1 %vm2356_vm5, %v2756_v54 }
 0x32b   :  { %v2550_v24 = vadd.f32 %v2534_v19, %v2448_v18  ;;  %v2535_v31 = vmul.f32 %v2519_v40, %v2451_v0 }
 0x32c   :  { %v2568_v26 = vmul.f32 0.7978846, %v2552_v11  ;;  %v2553_v16 = vadd.f32 %v2537_v46, %v2459_v39 }
 0x32d   :  { %v2566_v28 = vmul.f32 0.7978846, %v2550_v24  ;;  %v2551_v51 = vadd.f32 %v2535_v31, %v2451_v0 }
 0x32e   :  { %3768 = vtanh.f32 %v2568_v26  ;;  %v2569_v59 = vmul.f32 0.7978846, %v2553_v16 }
 0x32f   :  { %3770 = vtanh.f32 %v2566_v28  ;;  %v2567_v13 = vmul.f32 0.7978846, %v2551_v51 }
 0x330   :  { %3772 = vtanh.f32 %v2569_v59 }
 0x331   :  { %3774 = vtanh.f32 %v2567_v13 }
 0x337   :  { %v3486_v8 = vpop.f32.mrb[28].mxu1 }
 0x338   :  { %v2472_v44 = vadd.f32 %v3486_v8, %v5202_v7  ;;  %v2463_v34 = vpop.f32.mrb[29].mxu1  ;;  %v3769_v47 = vpop.eup %3768 }
 0x339   :  { %v2464_v50 = vadd.f32 %v5202_v7, %v2463_v34  ;;  %v3487_v22 = vpop.f32.mrb[30].mxu1  ;;  %v3771_v61 = vpop.eup %3770  ;;  %v2600_v41 = vadd.f32 1.0, %v3769_v47 }
 0x33a   :  { %v2508_v25 = vmul.f32 0.044715, %v2472_v44  ;;  %v2475_v43 = vadd.f32 %v3487_v22, %v5202_v7  ;;  %v2466_v53 = vpop.f32.mrb[31].mxu1  ;;  %v3773_v32 = vpop.eup %3772  ;;  %v2598_v10 = vadd.f32 1.0, %v3771_v61  ;;  %v2492_v31 = vmul.f32 0.5, %v2472_v44 }
 0x33b   :  { %v2506_v52 = vmul.f32 0.044715, %v2464_v50  ;;  %v2467_v57 = vadd.f32 %v5202_v7, %v2466_v53  ;;  %v3775_v38 = vpop.eup %3774  ;;  %v2601_v42 = vadd.f32 1.0, %v3773_v32  ;;  %v2616_v33 = vmul.f32 %v2600_v41, %v2488_v20 }
 0x33c   :  { %v2524_v1 = vmul.f32 %v2508_v25, %v2472_v44  ;;  %v2509_v60 = vmul.f32 0.044715, %v2475_v43  ;;  %v2599_v12 = vadd.f32 1.0, %v3775_v38  ;;  %v2614_v27 = vmul.f32 %v2598_v10, %v2486_v5 }
 0x33d   :  { %v2522_v56 = vmul.f32 %v2506_v52, %v2464_v50  ;;  %v2507_v21 = vmul.f32 0.044715, %v2467_v57  ;;  %v2617_v35 = vmul.f32 %v2601_v42, %v2489_v63  ;;  %v2493_v26 = vmul.f32 0.5, %v2475_v43  ;;  %v3786_v42 = vld [vmem:[#allocation2] sm:$0xff] }
 0x33e   :  { %v2540_v36 = vmul.f32 %v2524_v1, %v2472_v44  ;;  %v2525_v14 = vmul.f32 %v2509_v60, %v2475_v43  ;;  %v2615_v15 = vmul.f32 %v2599_v12, %v2487_v49  ;;  %v2490_v28 = vmul.f32 0.5, %v2464_v50  ;;  %v3785_v1 = vld [vmem:[#allocation2 + $0x10] sm:$0xff]  ;;  %v3787_v49 = vld [vmem:[#allocation2 + $0x18] sm:$0xff] }
 0x33f   :  { %v2538_v3 = vmul.f32 %v2522_v56, %v2464_v50  ;;  %v2523_v4 = vmul.f32 %v2507_v21, %v2467_v57  ;;  %v2758_v30 = vpack.c.bf16 %v2617_v35, %v2616_v33  ;;  %v2491_v51 = vmul.f32 0.5, %v2467_v57 }
 0x340   :  { %v2556_v7 = vadd.f32 %v2540_v36, %v2472_v44  ;;  %v2541_v18 = vmul.f32 %v2525_v14, %v2475_v43  ;;  %v2757_v17 = vpack.c.bf16 %v2615_v15, %v2614_v27  ;;  %v5316_v25 = vsub.s32 0, %v3992_v2  ;;  %v3788_v36 = vld [vmem:[#allocation2 + $0x8] sm:$0xff] }
 0x341   :  { %v2554_v6 = vadd.f32 %v2538_v3, %v2464_v50  ;;  %v2539_v62 = vmul.f32 %v2523_v4, %v2467_v57  ;;  %v5236_v50 = vld [vmem:[%s5279_s7 + $0x3] ss:$0 sm:$0xff]  ;;  %s3904_s7 = smov [#allocation8]  }
 0x342   :  { %v2572_v39 = vmul.f32 0.7978846, %v2556_v7  ;;  %v2557_v58 = vadd.f32 %v2541_v18, %v2475_v43  ;;  %3516 = vmatprep.mubr.msk.bf16.mxu1 %vm2356_vm5, %v2757_v17  ;;  %s2972_s19 = sshll.u32 %s3904_s7, 4  ;;  %s2973_s19 = int_to_ptr.vmem [resolvable:$true] %s2972_s19 }
 0x343   :  { %v2570_v23 = vmul.f32 0.7978846, %v2554_v6  ;;  %v2555_v55 = vadd.f32 %v2539_v62, %v2467_v57  ;;  %3517 = vmatmul.mubr.msk.bf16.gmra.mrb[44].mxu1 %vm2356_vm5, %v2758_v30  ;;  %v3789_v62 = vld [vmem:[#allocation2 + $0x30] sm:$0xff]  ;;  %s3867_s0 = scalar_lea.vmem %s2973_s19, 2048  ;;  %p3872_p11 = scmp.lt.s32.totalorder %s2973_s19, %s2973_s19 }
 0x344   :  { %3776 = vtanh.f32 %v2572_v39  ;;  %v2573_v0 = vmul.f32 0.7978846, %v2557_v58  ;;  %v5226_v45 = vpop.f32.mrb[32].mxu1  ;;  %v3790_v58 = vld [vmem:[#allocation2 + $0x20] sm:$0xff]  ;;  %p3868_p10 = scmp.ne.s32.totalorder %s2973_s19, %s3867_s0  ;;  %p3873_p12 = scmp.lt.s32.totalorder %s3867_s0, %s3867_s0 }
 0x345   :  { %3778 = vtanh.f32 %v2570_v23  ;;  %v2571_v54 = vmul.f32 0.7978846, %v2555_v55  ;;  %v3498_v48 = vpop.f32.mrb[33].mxu1  ;;  %v2748_v53 = vrot.slane %v5226_v45, %v5316_v25 }
 0x346   :  { %3780 = vtanh.f32 %v2573_v0  ;;  %v2742_v29 = vpop.f32.mrb[34].mxu1  ;;  %v3791_v0 = vld [vmem:[#allocation2 + $0x38] sm:$0xff]  ;;  %v3792_v48 = vld [vmem:[#allocation2 + $0x28] sm:$0xff]  ;;  %p3874_p13 = por %p3873_p12, %p3872_p11 }
 0x347   :  { %3782 = vtanh.f32 %v2571_v54  ;;  %v3499_v9 = vpop.f32.mrb[35].mxu1 }
 0x348   :  { %v5317_v9 = vsub.s32 1, %v3992_v2  ;;  %p3875_p0 = pnand %p3874_p13, %p3868_p10 }
 0x34e   :  { %v3777_v37 = vpop.eup %3776 }
 0x34f   :  { %v3779_v19 = vpop.eup %3778  ;;  %v2604_v40 = vadd.f32 1.0, %v3777_v37  ;;  %v2752_v37 = vrot.slane %v5226_v45, %v5317_v9 }
 0x350   :  { %v3781_v11 = vpop.eup %3780  ;;  %v2602_v46 = vadd.f32 1.0, %v3779_v19 }
 0x351   :  { %v3783_v24 = vpop.eup %3782  ;;  %v2605_v16 = vadd.f32 1.0, %v3781_v11  ;;  %v2620_v13 = vmul.f32 %v2604_v40, %v2492_v31 }
 0x352   :  { %v2603_v59 = vadd.f32 1.0, %v3783_v24  ;;  %v2618_v34 = vmul.f32 %v2602_v46, %v2490_v28 }
 0x353   :  { %v2621_v8 = vmul.f32 %v2605_v16, %v2493_v26 }
 0x354   :  { %v2619_v47 = vmul.f32 %v2603_v59, %v2491_v51  ;;  %v3793_v59 = vld [vmem:[#allocation2 + $0x50] sm:$0xff] }
 0x355   :  { %v2760_v22 = vpack.c.bf16 %v2621_v8, %v2620_v13 }
 0x356   :  { %v2759_v61 = vpack.c.bf16 %v2619_v47, %v2618_v34  ;;  %v3794_v34 = vld [vmem:[#allocation2 + $0x40] sm:$0xff]  ;;  %v3795_v47 = vld [vmem:[#allocation2 + $0x58] sm:$0xff] }
 0x358   :  { %3520 = vmatprep.mubr.msk.bf16.mxu1 %vm2356_vm5, %v2759_v61  ;;  %v3796_v61 = vld [vmem:[#allocation2 + $0x48] sm:$0xff] }
 0x359   :  { %3521 = vmatmul.mubr.msk.bf16.gmra.mrb[48].mxu1 %vm2356_vm5, %v2760_v22 }
 0x3ea   :  { %v3510_v44 = vpop.f32.mrb[36].mxu1 }
 0x3eb   :  { %v2860_v43 = vadd.f32 %v3510_v44, %v2748_v53  ;;  %v2851_v20 = vpop.f32.mrb[37].mxu1 }
 0x3ec   :  { %v2852_v41 = vadd.f32 %v2851_v20, %v2748_v53  ;;  %v3511_v32 = vpop.f32.mrb[38].mxu1 }
 0x3ed   :  { %v2921_v52 = vadd.f32 %v5236_v50, %v2860_v43  ;;  %v2863_v57 = vadd.f32 %v3511_v32, %v2748_v53  ;;  %v2854_v5 = vpop.f32.mrb[39].mxu1 }
 0x3ee   :  { %v2919_v10 = vadd.f32 %v5236_v50, %v2852_v41  ;;  %v2855_v38 = vadd.f32 %v2854_v5, %v2748_v53 }
 0x3ef   :  { %v2937_v60 = vadd.f32 %v3785_v1, %v2921_v52  ;;  %v2922_v63 = vadd.f32 %v5236_v50, %v2863_v57 }
 0x3f0   :  { %v2935_v56 = vadd.f32 %v3786_v42, %v2919_v10  ;;  %v2920_v21 = vadd.f32 %v5236_v50, %v2855_v38  ;;  %v3797_v38 = vld [vmem:[#allocation2 + $0x70] sm:$0xff] }
 0x3f1   :  { %2953 = vst [vmem:[#allocation8 + $0x10] sm:$0xff] %v2937_v60  ;;  %v2938_v12 = vadd.f32 %v3787_v49, %v2922_v63  ;;  %v3798_v63 = vld [vmem:[#allocation2 + $0x60] sm:$0xff] }
 0x3f2   :  { %2951 = vst [vmem:[#allocation8] sm:$0xff] %v2935_v56  ;;  %v2936_v14 = vadd.f32 %v3788_v36, %v2920_v21  ;;  %v3799_v21 = vld [vmem:[#allocation2 + $0x78] sm:$0xff] }
 0x3f3   :  { %2954 = vst [vmem:[#allocation8 + $0x18] sm:$0xff] %v2938_v12  ;;  %v3800_v12 = vld [vmem:[#allocation2 + $0x68] sm:$0xff] }
 0x3f4   :  { %2952 = vst [vmem:[#allocation8 + $0x8] sm:$0xff] %v2936_v14 }
 0x3fd   :  { %v3514_v33 = vpop.f32.mrb[40].mxu1 }
 0x3fe   :  { %v2876_v35 = vadd.f32 %v3514_v33, %v2748_v53  ;;  %v2867_v3 = vpop.f32.mrb[41].mxu1 }
 0x3ff   :  { %v2868_v4 = vadd.f32 %v2867_v3, %v2748_v53  ;;  %v3515_v27 = vpop.f32.mrb[42].mxu1 }
 0x400   :  { %v2925_v15 = vadd.f32 %v5236_v50, %v2876_v35  ;;  %v2879_v7 = vadd.f32 %v3515_v27, %v2748_v53  ;;  %v2870_v18 = vpop.f32.mrb[43].mxu1 }
 0x401   :  { %v2923_v30 = vadd.f32 %v5236_v50, %v2868_v4  ;;  %v2871_v6 = vadd.f32 %v2870_v18, %v2748_v53 }
 0x402   :  { %v2941_v17 = vadd.f32 %v3789_v62, %v2925_v15  ;;  %v2926_v39 = vadd.f32 %v5236_v50, %v2879_v7 }
 0x403   :  { %v2939_v23 = vadd.f32 %v3790_v58, %v2923_v30  ;;  %v2924_v55 = vadd.f32 %v5236_v50, %v2871_v6 }
 0x404   :  { %2957 = vst [vmem:[#allocation8 + $0x30] sm:$0xff] %v2941_v17  ;;  %v2942_v54 = vadd.f32 %v3791_v0, %v2926_v39 }
 0x405   :  { %2955 = vst [vmem:[#allocation8 + $0x20] sm:$0xff] %v2939_v23  ;;  %v2940_v29 = vadd.f32 %v3792_v48, %v2924_v55 }
 0x406   :  { %2958 = vst [vmem:[#allocation8 + $0x38] sm:$0xff] %v2942_v54 }
 0x407   :  { %2956 = vst [vmem:[#allocation8 + $0x28] sm:$0xff] %v2940_v29 }
 0x416   :  { %v3518_v19 = vpop.f32.mrb[44].mxu1 }
 0x417   :  { %v2892_v40 = vadd.f32 %v3518_v19, %v2752_v37  ;;  %v2883_v11 = vpop.f32.mrb[45].mxu1 }
 0x418   :  { %v2884_v46 = vadd.f32 %v2883_v11, %v2752_v37  ;;  %v3519_v24 = vpop.f32.mrb[46].mxu1 }
 0x419   :  { %v2929_v31 = vadd.f32 %v5236_v50, %v2892_v40  ;;  %v2895_v26 = vadd.f32 %v3519_v24, %v2752_v37  ;;  %v2886_v16 = vpop.f32.mrb[47].mxu1 }
 0x41a   :  { %v2927_v28 = vadd.f32 %v5236_v50, %v2884_v46  ;;  %v2887_v51 = vadd.f32 %v2886_v16, %v2752_v37 }
 0x41b   :  { %v2945_v13 = vadd.f32 %v3793_v59, %v2929_v31  ;;  %v2930_v8 = vadd.f32 %v5236_v50, %v2895_v26 }
 0x41c   :  { %v2943_v2 = vadd.f32 %v3794_v34, %v2927_v28  ;;  %v2928_v45 = vadd.f32 %v5236_v50, %v2887_v51 }
 0x41d   :  { %2961 = vst [vmem:[#allocation8 + $0x50] sm:$0xff] %v2945_v13  ;;  %v2946_v22 = vadd.f32 %v3795_v47, %v2930_v8 }
 0x41e   :  { %2959 = vst [vmem:[#allocation8 + $0x40] sm:$0xff] %v2943_v2  ;;  %v2944_v25 = vadd.f32 %v3796_v61, %v2928_v45 }
 0x41f   :  { %2962 = vst [vmem:[#allocation8 + $0x58] sm:$0xff] %v2946_v22 }
 0x420   :  { %2960 = vst [vmem:[#allocation8 + $0x48] sm:$0xff] %v2944_v25 }
 0x42c   :  { %v3522_v53 = vpop.f32.mrb[48].mxu1 }
 0x42d   :  { %v2908_v44 = vadd.f32 %v3522_v53, %v2752_v37  ;;  %v2899_v43 = vpop.f32.mrb[49].mxu1 }
 0x42e   :  { %v2900_v20 = vadd.f32 %v2899_v43, %v2752_v37  ;;  %v3523_v41 = vpop.f32.mrb[50].mxu1 }
 0x42f   :  { %v2933_v32 = vadd.f32 %v5236_v50, %v2908_v44  ;;  %v2911_v52 = vadd.f32 %v3523_v41, %v2752_v37  ;;  %v2902_v57 = vpop.f32.mrb[51].mxu1 }
 0x430   :  { %v2931_v5 = vadd.f32 %v5236_v50, %v2900_v20  ;;  %v2903_v10 = vadd.f32 %v2902_v57, %v2752_v37 }
 0x431   :  { %v2949_v1 = vadd.f32 %v3797_v38, %v2933_v32  ;;  %v2934_v60 = vadd.f32 %v5236_v50, %v2911_v52 }
 0x432   :  { %v2947_v42 = vadd.f32 %v3798_v63, %v2931_v5  ;;  %v2932_v56 = vadd.f32 %v5236_v50, %v2903_v10 }
 0x433   :  { %2965 = vst [vmem:[#allocation8 + $0x70] sm:$0xff] %v2949_v1  ;;  %v2950_v49 = vadd.f32 %v3799_v21, %v2934_v60 }
 0x434   :  { %2963 = vst [vmem:[#allocation8 + $0x60] sm:$0xff] %v2947_v42  ;;  %v2948_v36 = vadd.f32 %v3800_v12, %v2932_v56 }
 0x435   :  { %2966 = vst [vmem:[#allocation8 + $0x78] sm:$0xff] %v2950_v49 }
 0x436   :  { %2964 = vst [vmem:[#allocation8 + $0x68] sm:$0xff] %v2948_v36 }
 0x437   :  { %3878 = shalt.err (!%p3875_p0)
}
 0x438   :  { %s3879_s21 = scalar_lea.hbm %s5280_s8, 2048 }
 0x439   :  { %p3880_p1 = scmp.ne.s32.totalorder %s5280_s8, %s3879_s21  ;;  %p3883_p2 = scmp.lt.u32.totalorder %s3879_s21, %s5280_s8 }
 0x43b   :  { %p3885_p3 = pnand %p3883_p2, %p3880_p1 }
 0x43d   :  { %3888 = shalt.err (!%p3885_p3)
}
 0x43e   :  { %2978 = dma.vmem_to_hbm [thread:$0]  %s2973_s19, 2048, %s5280_s8, [#allocation4], %s3899_s2, %s3899_s2, %s3900_s28  }
 0x43f   :  { %3893 = dma.done.wait [#allocation4], 2048  }
 0x440   :  { %3894 = vsyncadd [#allocation4], 4294965248 }
 0x441   :  { %2982 = vsyncpa [#allocation3], 1 }
 0x442   :  { %2983 = vsyncpa [#allocation6], 1 }
 0x443   :  { %2984 = vsyncpa [#allocation4], 1 }

</bundles_post_ra>
